<compile_context>
chip_gen: v7x
topology: tpu7x:2x2x1
jax: 0.10.0
libtpu: 0.0.40
codegen_flags: <defaults>
</compile_context>

<pallas_src>
import functools

import jax
import jax.numpy as jnp
import numpy as np
from jax import lax
from jax.experimental import pallas as pl
from jax.experimental.pallas import tpu as pltpu


# ----------------------------- Fused Pallas kernel ------------------------------

def _fused_net_kernel(h_ref, adj_ref, w_in_ref, b_in_ref,
                      w_q_ref, b_q_ref, w_k_ref, b_k_ref, w_v_ref, b_v_ref,
                      w_out_ref, b_out_ref, o_ref, *, num_layers):
    # Additive attention bias, computed ONCE (int8 adjacency -> f32 bias).
    # Masked entries later become exp(-1e30 - m) == 0, so no second select is needed
    # (every row has a self-loop -> at least one real entry, denom > 0).
    bias = jnp.where(adj_ref[...].astype(jnp.int32) > 0,
                     jnp.float32(0.0), jnp.float32(-1e30))             # [N, N] f32

    # input projection (bf16 MXU operands, f32 accumulate)
    h = (jnp.dot(h_ref[...].astype(jnp.bfloat16), w_in_ref[...],
                 preferred_element_type=jnp.float32) + b_in_ref[...])  # [N, H] f32

    # SparseMHA layers (nh = 1)
    for l in range(num_layers):
        hb = h.astype(jnp.bfloat16)
        # Three separate aligned dots (no lane-offset slices); attention scale is
        # already folded into the Q weights/bias at param-prep time.
        q = jnp.dot(hb, w_q_ref[l], preferred_element_type=jnp.float32) + b_q_ref[l]
        k = jnp.dot(hb, w_k_ref[l], preferred_element_type=jnp.float32) + b_k_ref[l]
        v = jnp.dot(hb, w_v_ref[l], preferred_element_type=jnp.float32) + b_v_ref[l]

        # SDDMM restricted to edges: contract last dims directly (no k transpose),
        # then add the precomputed mask bias.
        s = lax.dot_general(q.astype(jnp.bfloat16), k.astype(jnp.bfloat16),
                            (((1,), (1,)), ((), ())),
                            preferred_element_type=jnp.float32) + bias  # [N, N] f32

        # sparse softmax over neighbors (masked entries underflow to exactly 0)
        m = jnp.max(s, axis=-1, keepdims=True)
        p = jnp.exp(s - m)                                              # [N, N] f32
        denom = jnp.sum(p, axis=-1, keepdims=True)                      # [N, 1]

        # SpMM with deferred normalization: [N,H] multiply instead of [N,N].
        h_un = jnp.dot(p.astype(jnp.bfloat16), v.astype(jnp.bfloat16),
                       preferred_element_type=jnp.float32)              # [N, H]
        h = h_un * pl.reciprocal(denom, approx=True)

    # output projection + log_softmax, written lane-dense (classes padded to 128;
    # pad columns have weight 0 and bias -1e30 -> no effect on the log-sum-exp).
    z = (jnp.dot(h.astype(jnp.bfloat16), w_out_ref[...],
                 preferred_element_type=jnp.float32) + b_out_ref[...])  # [N, C_pad]
    mz = jnp.max(z, axis=-1, keepdims=True)
    lse = jnp.log(jnp.sum(jnp.exp(z - mz), axis=-1, keepdims=True)) + mz
    o_ref[...] = (z - lse).astype(o_ref.dtype)


# ------------------------------- Wrapper / glue --------------------------------

def prepare_fused_params(params, num_classes, c_pad=128):
    """One-time param prep (hoisted out of the forward): fold the attention scale into
    the Q projection, stack per-layer weights, pad the output head to 128 lanes, and
    cast all MXU weight operands to bf16 (biases stay f32)."""
    wi, bi = params["input_proj"]
    hidden = wi.shape[1]
    scale = float(hidden) ** -0.5            # nh = 1 -> head_dim = hidden

    w_q = jnp.stack([lp["q"][0] * scale for lp in params["layers"]]).astype(jnp.bfloat16)
    b_q = jnp.stack([lp["q"][1] * scale for lp in params["layers"]])         # [L,1,H] f32
    w_k = jnp.stack([lp["k"][0] for lp in params["layers"]]).astype(jnp.bfloat16)
    b_k = jnp.stack([lp["k"][1] for lp in params["layers"]])
    w_v = jnp.stack([lp["v"][0] for lp in params["layers"]]).astype(jnp.bfloat16)
    b_v = jnp.stack([lp["v"][1] for lp in params["layers"]])

    wo, bo = params["output_proj"]
    w_out = (jnp.zeros((hidden, c_pad), jnp.float32)
             .at[:, :num_classes].set(wo).astype(jnp.bfloat16))
    b_out = jnp.full((1, c_pad), -1e30, jnp.float32).at[:, :num_classes].set(bo)

    return {
        "w_in": wi.astype(jnp.bfloat16), "b_in": bi,
        "w_q": w_q, "b_q": b_q, "w_k": w_k, "b_k": b_k, "w_v": w_v, "b_v": b_v,
        "w_out": w_out, "b_out": b_out,
    }


@jax.jit
def net_forward(fused, adj_i8, h):
    """Fused Pallas forward pass of Net.

    Returns lane-dense padded log-probs [N, 128]; columns >= num_classes are padding
    (~ -1e30) and do not affect the real class log-probabilities.
    """
    N = h.shape[0]
    L = fused["w_q"].shape[0]
    c_pad = fused["w_out"].shape[1]

    kernel = functools.partial(_fused_net_kernel, num_layers=L)
    args = (h, adj_i8,
            fused["w_in"], fused["b_in"],
            fused["w_q"], fused["b_q"],
            fused["w_k"], fused["b_k"],
            fused["w_v"], fused["b_v"],
            fused["w_out"], fused["b_out"])
    vmem = pl.BlockSpec(memory_space=pltpu.MemorySpace.VMEM)
    return pl.pallas_call(
        kernel,
        out_shape=jax.ShapeDtypeStruct((N, c_pad), jnp.float32),
        in_specs=[vmem] * len(args),
        out_specs=vmem,
    )(*args)


# --------------------------------- Params -----------------------------------

def init_linear(key, din, dout):
    # Deterministic PyTorch-style init: U(-1/sqrt(din), 1/sqrt(din)).
    kw, kb = jax.random.split(key)
    bound = 1.0 / np.sqrt(din)
    w = jax.random.uniform(kw, (din, dout), jnp.float32, -bound, bound)
    b = jax.random.uniform(kb, (1, dout), jnp.float32, -bound, bound)
    return w, b


def init_net(key, num_layers, in_dim, num_hidden, num_classes):
    keys = jax.random.split(key, 2 + 3 * num_layers)
    params = {
        "input_proj": init_linear(keys[0], in_dim, num_hidden),
        "output_proj": init_linear(keys[1], num_hidden, num_classes),
        "layers": [],
    }
    for l in range(num_layers):
        kq, kk, kv = keys[2 + 3 * l], keys[3 + 3 * l], keys[4 + 3 * l]
        params["layers"].append({
            "q": init_linear(kq, num_hidden, num_hidden),
            "k": init_linear(kk, num_hidden, num_hidden),
            "v": init_linear(kv, num_hidden, num_hidden),
        })
    return params


def net_forward_ref(params, adj, h, num_heads=1):
    """Pure-JAX f32 reference for correctness checking."""
    wi, bi = params["input_proj"]
    h = h @ wi + bi
    hidden = wi.shape[1]
    scale = float(hidden // num_heads) ** -0.5
    mask = adj > 0
    for lp in params["layers"]:
        q = (h @ lp["q"][0] + lp["q"][1]) * scale
        k = h @ lp["k"][0] + lp["k"][1]
        v = h @ lp["v"][0] + lp["v"][1]
        s = jnp.where(mask, q @ k.T, -1e30)
        m = jnp.max(s, axis=-1, keepdims=True)
        p = jnp.where(mask, jnp.exp(s - m), 0.0)
        p = p / jnp.sum(p, axis=-1, keepdims=True)
        h = p @ v
    wo, bo = params["output_proj"]
    return jax.nn.log_softmax(h @ wo + bo, axis=-1)


# --------------------------------- Driver -----------------------------------

if __name__ == "__main__":
    num_layers, in_dim, num_hidden, num_classes = 2, 16, 32, 8
    N = 128  # number of graph nodes

    key = jax.random.PRNGKey(0)
    k_param, k_feat, k_adj = jax.random.split(key, 3)

    params = init_net(k_param, num_layers, in_dim, num_hidden, num_classes)
    h = jax.random.normal(k_feat, (N, in_dim), jnp.float32)

    # Synthetic sparse graph: random edges + self loops (every node has >= 1 neighbor),
    # stored as int8 (the only O(N^2) operand -> 4x less DMA than f32).
    adj = jax.random.bernoulli(k_adj, 0.15, (N, N))
    adj = jnp.logical_or(adj, jnp.eye(N, dtype=bool)).astype(jnp.int8)

    # Param prep is hoisted: done ONCE here, not inside the per-call forward.
    fused = prepare_fused_params(params, num_classes)
    fused = jax.tree_util.tree_map(jax.block_until_ready, fused)

    out_padded = net_forward(fused, adj, h)
    out_padded = jax.block_until_ready(out_padded)
    out = np.asarray(out_padded)[:, :num_classes]

    ref = np.asarray(net_forward_ref(params, adj, h))
    # tolerance covers bf16 MXU operands (f32 accumulate) + the EUP approximate
    # reciprocal used for the softmax denominator, compounded over 2 layers.
    np.testing.assert_allclose(out, ref, rtol=2e-2, atol=2e-2)

    print("KERNEL_OK")
</pallas_src>

<mosaic_0001>
module attributes {stable_mosaic.version = 11 : i64} {
  func.func @_fused_net_kernel(%arg0: memref<128x16xf32, #tpu.memory_space<vmem>>, %arg1: memref<128x128xi8, #tpu.memory_space<vmem>>, %arg2: memref<16x32xbf16, #tpu.memory_space<vmem>>, %arg3: memref<1x32xf32, #tpu.memory_space<vmem>>, %arg4: memref<2x32x32xbf16, #tpu.memory_space<vmem>>, %arg5: memref<2x1x32xf32, #tpu.memory_space<vmem>>, %arg6: memref<2x32x32xbf16, #tpu.memory_space<vmem>>, %arg7: memref<2x1x32xf32, #tpu.memory_space<vmem>>, %arg8: memref<2x32x32xbf16, #tpu.memory_space<vmem>>, %arg9: memref<2x1x32xf32, #tpu.memory_space<vmem>>, %arg10: memref<32x128xbf16, #tpu.memory_space<vmem>>, %arg11: memref<1x128xf32, #tpu.memory_space<vmem>>, %arg12: memref<128x128xf32, #tpu.memory_space<vmem>>) attributes {dimension_semantics = [], scalar_prefetch = 0 : i64, scratch_operands = 0 : i64, tpu.core_type = #tpu.core_type<tc>} {
    %c0 = arith.constant 0 : index
    %c0_0 = arith.constant 0 : index
    %0 = vector.load %arg1[%c0, %c0_0] : memref<128x128xi8, #tpu.memory_space<vmem>>, vector<128x128xi8>
    %1 = arith.extsi %0 : vector<128x128xi8> to vector<128x128xi32>
    %c0_i32 = arith.constant 0 : i32
    %2 = vector.broadcast %c0_i32 : i32 to vector<128x128xi32>
    %3 = arith.cmpi sgt, %1, %2 : vector<128x128xi32>
    %cst = arith.constant 0.000000e+00 : f32
    %cst_1 = arith.constant -1.000000e+30 : f32
    %4 = vector.broadcast %cst : f32 to vector<128x128xf32>
    %5 = vector.broadcast %cst_1 : f32 to vector<128x128xf32>
    %6 = arith.select %3, %4, %5 : vector<128x128xi1>, vector<128x128xf32>
    %c0_2 = arith.constant 0 : index
    %c0_3 = arith.constant 0 : index
    %7 = vector.load %arg0[%c0_2, %c0_3] : memref<128x16xf32, #tpu.memory_space<vmem>>, vector<128x16xf32>
    %8 = arith.truncf %7 : vector<128x16xf32> to vector<128x16xbf16>
    %c0_4 = arith.constant 0 : index
    %c0_5 = arith.constant 0 : index
    %9 = vector.load %arg2[%c0_4, %c0_5] : memref<16x32xbf16, #tpu.memory_space<vmem>>, vector<16x32xbf16>
    %cst_6 = arith.constant dense<0.000000e+00> : vector<128x32xf32>
    %10 = tpu.matmul %8, %9, %cst_6 {dimension_numbers = #tpu.dot_dimension_numbers<[1], [0], [0], [1], [0, 0, 1, 1], [], []>} : vector<128x16xbf16>, vector<16x32xbf16>, vector<128x32xf32> -> vector<128x32xf32>
    %c0_7 = arith.constant 0 : index
    %c0_8 = arith.constant 0 : index
    %11 = vector.load %arg3[%c0_7, %c0_8] : memref<1x32xf32, #tpu.memory_space<vmem>>, vector<1x32xf32>
    %12 = vector.broadcast %11 : vector<1x32xf32> to vector<128x32xf32>
    %13 = arith.addf %10, %12 : vector<128x32xf32>
    %14 = arith.truncf %13 : vector<128x32xf32> to vector<128x32xbf16>
    %c0_9 = arith.constant 0 : index
    %c0_10 = arith.constant 0 : index
    %c0_11 = arith.constant 0 : index
    %15 = vector.load %arg4[%c0_9, %c0_10, %c0_11] : memref<2x32x32xbf16, #tpu.memory_space<vmem>>, vector<1x32x32xbf16>
    %16 = vector.shape_cast %15 : vector<1x32x32xbf16> to vector<32x32xbf16>
    %cst_12 = arith.constant dense<0.000000e+00> : vector<128x32xf32>
    %17 = tpu.matmul %14, %16, %cst_12 {dimension_numbers = #tpu.dot_dimension_numbers<[1], [0], [0], [1], [0, 0, 1, 1], [], []>} : vector<128x32xbf16>, vector<32x32xbf16>, vector<128x32xf32> -> vector<128x32xf32>
    %c0_13 = arith.constant 0 : index
    %c0_14 = arith.constant 0 : index
    %c0_15 = arith.constant 0 : index
    %18 = vector.load %arg5[%c0_13, %c0_14, %c0_15] : memref<2x1x32xf32, #tpu.memory_space<vmem>>, vector<1x1x32xf32>
    %19 = vector.shape_cast %18 : vector<1x1x32xf32> to vector<1x32xf32>
    %20 = vector.broadcast %19 : vector<1x32xf32> to vector<128x32xf32>
    %21 = arith.addf %17, %20 : vector<128x32xf32>
    %c0_16 = arith.constant 0 : index
    %c0_17 = arith.constant 0 : index
    %c0_18 = arith.constant 0 : index
    %22 = vector.load %arg6[%c0_16, %c0_17, %c0_18] : memref<2x32x32xbf16, #tpu.memory_space<vmem>>, vector<1x32x32xbf16>
    %23 = vector.shape_cast %22 : vector<1x32x32xbf16> to vector<32x32xbf16>
    %cst_19 = arith.constant dense<0.000000e+00> : vector<128x32xf32>
    %24 = tpu.matmul %14, %23, %cst_19 {dimension_numbers = #tpu.dot_dimension_numbers<[1], [0], [0], [1], [0, 0, 1, 1], [], []>} : vector<128x32xbf16>, vector<32x32xbf16>, vector<128x32xf32> -> vector<128x32xf32>
    %c0_20 = arith.constant 0 : index
    %c0_21 = arith.constant 0 : index
    %c0_22 = arith.constant 0 : index
    %25 = vector.load %arg7[%c0_20, %c0_21, %c0_22] : memref<2x1x32xf32, #tpu.memory_space<vmem>>, vector<1x1x32xf32>
    %26 = vector.shape_cast %25 : vector<1x1x32xf32> to vector<1x32xf32>
    %27 = vector.broadcast %26 : vector<1x32xf32> to vector<128x32xf32>
    %28 = arith.addf %24, %27 : vector<128x32xf32>
    %c0_23 = arith.constant 0 : index
    %c0_24 = arith.constant 0 : index
    %c0_25 = arith.constant 0 : index
    %29 = vector.load %arg8[%c0_23, %c0_24, %c0_25] : memref<2x32x32xbf16, #tpu.memory_space<vmem>>, vector<1x32x32xbf16>
    %30 = vector.shape_cast %29 : vector<1x32x32xbf16> to vector<32x32xbf16>
    %cst_26 = arith.constant dense<0.000000e+00> : vector<128x32xf32>
    %31 = tpu.matmul %14, %30, %cst_26 {dimension_numbers = #tpu.dot_dimension_numbers<[1], [0], [0], [1], [0, 0, 1, 1], [], []>} : vector<128x32xbf16>, vector<32x32xbf16>, vector<128x32xf32> -> vector<128x32xf32>
    %c0_27 = arith.constant 0 : index
    %c0_28 = arith.constant 0 : index
    %c0_29 = arith.constant 0 : index
    %32 = vector.load %arg9[%c0_27, %c0_28, %c0_29] : memref<2x1x32xf32, #tpu.memory_space<vmem>>, vector<1x1x32xf32>
    %33 = vector.shape_cast %32 : vector<1x1x32xf32> to vector<1x32xf32>
    %34 = vector.broadcast %33 : vector<1x32xf32> to vector<128x32xf32>
    %35 = arith.addf %31, %34 : vector<128x32xf32>
    %36 = arith.truncf %21 : vector<128x32xf32> to vector<128x32xbf16>
    %37 = arith.truncf %28 : vector<128x32xf32> to vector<128x32xbf16>
    %cst_30 = arith.constant dense<0.000000e+00> : vector<128x128xf32>
    %38 = tpu.matmul %36, %37, %cst_30 {dimension_numbers = #tpu.dot_dimension_numbers<[1], [1], [0], [0], [0, 0, 1, 0], [], []>} : vector<128x32xbf16>, vector<128x32xbf16>, vector<128x128xf32> -> vector<128x128xf32>
    %39 = arith.addf %38, %6 : vector<128x128xf32>
    %cst_31 = arith.constant dense<0xFF800000> : vector<128xf32>
    %40 = vector.multi_reduction <maximumf>, %39, %cst_31 [1] : vector<128x128xf32> to vector<128xf32>
    %41 = vector.shape_cast %40 : vector<128xf32> to vector<128x1xf32>
    %42 = vector.broadcast %41 : vector<128x1xf32> to vector<128x128xf32>
    %43 = arith.subf %39, %42 : vector<128x128xf32>
    %44 = math.exp %43 : vector<128x128xf32>
    %cst_32 = arith.constant dense<0.000000e+00> : vector<128xf32>
    %45 = vector.multi_reduction <add>, %44, %cst_32 [1] : vector<128x128xf32> to vector<128xf32>
    %46 = vector.shape_cast %45 : vector<128xf32> to vector<128x1xf32>
    %47 = arith.truncf %44 : vector<128x128xf32> to vector<128x128xbf16>
    %48 = arith.truncf %35 : vector<128x32xf32> to vector<128x32xbf16>
    %cst_33 = arith.constant dense<0.000000e+00> : vector<128x32xf32>
    %49 = tpu.matmul %47, %48, %cst_33 {dimension_numbers = #tpu.dot_dimension_numbers<[1], [0], [0], [1], [0, 0, 1, 1], [], []>} : vector<128x128xbf16>, vector<128x32xbf16>, vector<128x32xf32> -> vector<128x32xf32>
    %50 = tpu.reciprocal %46 {approx = true} : vector<128x1xf32> -> vector<128x1xf32>
    %51 = vector.broadcast %50 : vector<128x1xf32> to vector<128x32xf32>
    %52 = arith.mulf %49, %51 : vector<128x32xf32>
    %53 = arith.truncf %52 : vector<128x32xf32> to vector<128x32xbf16>
    %c1 = arith.constant 1 : index
    %c0_34 = arith.constant 0 : index
    %c0_35 = arith.constant 0 : index
    %54 = vector.load %arg4[%c1, %c0_34, %c0_35] : memref<2x32x32xbf16, #tpu.memory_space<vmem>>, vector<1x32x32xbf16>
    %55 = vector.shape_cast %54 : vector<1x32x32xbf16> to vector<32x32xbf16>
    %cst_36 = arith.constant dense<0.000000e+00> : vector<128x32xf32>
    %56 = tpu.matmul %53, %55, %cst_36 {dimension_numbers = #tpu.dot_dimension_numbers<[1], [0], [0], [1], [0, 0, 1, 1], [], []>} : vector<128x32xbf16>, vector<32x32xbf16>, vector<128x32xf32> -> vector<128x32xf32>
    %c1_37 = arith.constant 1 : index
    %c0_38 = arith.constant 0 : index
    %c0_39 = arith.constant 0 : index
    %57 = vector.load %arg5[%c1_37, %c0_38, %c0_39] : memref<2x1x32xf32, #tpu.memory_space<vmem>>, vector<1x1x32xf32>
    %58 = vector.shape_cast %57 : vector<1x1x32xf32> to vector<1x32xf32>
    %59 = vector.broadcast %58 : vector<1x32xf32> to vector<128x32xf32>
    %60 = arith.addf %56, %59 : vector<128x32xf32>
    %c1_40 = arith.constant 1 : index
    %c0_41 = arith.constant 0 : index
    %c0_42 = arith.constant 0 : index
    %61 = vector.load %arg6[%c1_40, %c0_41, %c0_42] : memref<2x32x32xbf16, #tpu.memory_space<vmem>>, vector<1x32x32xbf16>
    %62 = vector.shape_cast %61 : vector<1x32x32xbf16> to vector<32x32xbf16>
    %cst_43 = arith.constant dense<0.000000e+00> : vector<128x32xf32>
    %63 = tpu.matmul %53, %62, %cst_43 {dimension_numbers = #tpu.dot_dimension_numbers<[1], [0], [0], [1], [0, 0, 1, 1], [], []>} : vector<128x32xbf16>, vector<32x32xbf16>, vector<128x32xf32> -> vector<128x32xf32>
    %c1_44 = arith.constant 1 : index
    %c0_45 = arith.constant 0 : index
    %c0_46 = arith.constant 0 : index
    %64 = vector.load %arg7[%c1_44, %c0_45, %c0_46] : memref<2x1x32xf32, #tpu.memory_space<vmem>>, vector<1x1x32xf32>
    %65 = vector.shape_cast %64 : vector<1x1x32xf32> to vector<1x32xf32>
    %66 = vector.broadcast %65 : vector<1x32xf32> to vector<128x32xf32>
    %67 = arith.addf %63, %66 : vector<128x32xf32>
    %c1_47 = arith.constant 1 : index
    %c0_48 = arith.constant 0 : index
    %c0_49 = arith.constant 0 : index
    %68 = vector.load %arg8[%c1_47, %c0_48, %c0_49] : memref<2x32x32xbf16, #tpu.memory_space<vmem>>, vector<1x32x32xbf16>
    %69 = vector.shape_cast %68 : vector<1x32x32xbf16> to vector<32x32xbf16>
    %cst_50 = arith.constant dense<0.000000e+00> : vector<128x32xf32>
    %70 = tpu.matmul %53, %69, %cst_50 {dimension_numbers = #tpu.dot_dimension_numbers<[1], [0], [0], [1], [0, 0, 1, 1], [], []>} : vector<128x32xbf16>, vector<32x32xbf16>, vector<128x32xf32> -> vector<128x32xf32>
    %c1_51 = arith.constant 1 : index
    %c0_52 = arith.constant 0 : index
    %c0_53 = arith.constant 0 : index
    %71 = vector.load %arg9[%c1_51, %c0_52, %c0_53] : memref<2x1x32xf32, #tpu.memory_space<vmem>>, vector<1x1x32xf32>
    %72 = vector.shape_cast %71 : vector<1x1x32xf32> to vector<1x32xf32>
    %73 = vector.broadcast %72 : vector<1x32xf32> to vector<128x32xf32>
    %74 = arith.addf %70, %73 : vector<128x32xf32>
    %75 = arith.truncf %60 : vector<128x32xf32> to vector<128x32xbf16>
    %76 = arith.truncf %67 : vector<128x32xf32> to vector<128x32xbf16>
    %cst_54 = arith.constant dense<0.000000e+00> : vector<128x128xf32>
    %77 = tpu.matmul %75, %76, %cst_54 {dimension_numbers = #tpu.dot_dimension_numbers<[1], [1], [0], [0], [0, 0, 1, 0], [], []>} : vector<128x32xbf16>, vector<128x32xbf16>, vector<128x128xf32> -> vector<128x128xf32>
    %78 = arith.addf %77, %6 : vector<128x128xf32>
    %cst_55 = arith.constant dense<0xFF800000> : vector<128xf32>
    %79 = vector.multi_reduction <maximumf>, %78, %cst_55 [1] : vector<128x128xf32> to vector<128xf32>
    %80 = vector.shape_cast %79 : vector<128xf32> to vector<128x1xf32>
    %81 = vector.broadcast %80 : vector<128x1xf32> to vector<128x128xf32>
    %82 = arith.subf %78, %81 : vector<128x128xf32>
    %83 = math.exp %82 : vector<128x128xf32>
    %cst_56 = arith.constant dense<0.000000e+00> : vector<128xf32>
    %84 = vector.multi_reduction <add>, %83, %cst_56 [1] : vector<128x128xf32> to vector<128xf32>
    %85 = vector.shape_cast %84 : vector<128xf32> to vector<128x1xf32>
    %86 = arith.truncf %83 : vector<128x128xf32> to vector<128x128xbf16>
    %87 = arith.truncf %74 : vector<128x32xf32> to vector<128x32xbf16>
    %cst_57 = arith.constant dense<0.000000e+00> : vector<128x32xf32>
    %88 = tpu.matmul %86, %87, %cst_57 {dimension_numbers = #tpu.dot_dimension_numbers<[1], [0], [0], [1], [0, 0, 1, 1], [], []>} : vector<128x128xbf16>, vector<128x32xbf16>, vector<128x32xf32> -> vector<128x32xf32>
    %89 = tpu.reciprocal %85 {approx = true} : vector<128x1xf32> -> vector<128x1xf32>
    %90 = vector.broadcast %89 : vector<128x1xf32> to vector<128x32xf32>
    %91 = arith.mulf %88, %90 : vector<128x32xf32>
    %92 = arith.truncf %91 : vector<128x32xf32> to vector<128x32xbf16>
    %c0_58 = arith.constant 0 : index
    %c0_59 = arith.constant 0 : index
    %93 = vector.load %arg10[%c0_58, %c0_59] : memref<32x128xbf16, #tpu.memory_space<vmem>>, vector<32x128xbf16>
    %cst_60 = arith.constant dense<0.000000e+00> : vector<128x128xf32>
    %94 = tpu.matmul %92, %93, %cst_60 {dimension_numbers = #tpu.dot_dimension_numbers<[1], [0], [0], [1], [0, 0, 1, 1], [], []>} : vector<128x32xbf16>, vector<32x128xbf16>, vector<128x128xf32> -> vector<128x128xf32>
    %c0_61 = arith.constant 0 : index
    %c0_62 = arith.constant 0 : index
    %95 = vector.load %arg11[%c0_61, %c0_62] : memref<1x128xf32, #tpu.memory_space<vmem>>, vector<1x128xf32>
    %96 = vector.broadcast %95 : vector<1x128xf32> to vector<128x128xf32>
    %97 = arith.addf %94, %96 : vector<128x128xf32>
    %cst_63 = arith.constant dense<0xFF800000> : vector<128xf32>
    %98 = vector.multi_reduction <maximumf>, %97, %cst_63 [1] : vector<128x128xf32> to vector<128xf32>
    %99 = vector.shape_cast %98 : vector<128xf32> to vector<128x1xf32>
    %100 = vector.broadcast %99 : vector<128x1xf32> to vector<128x128xf32>
    %101 = arith.subf %97, %100 : vector<128x128xf32>
    %102 = math.exp %101 : vector<128x128xf32>
    %cst_64 = arith.constant dense<0.000000e+00> : vector<128xf32>
    %103 = vector.multi_reduction <add>, %102, %cst_64 [1] : vector<128x128xf32> to vector<128xf32>
    %104 = vector.shape_cast %103 : vector<128xf32> to vector<128x1xf32>
    %105 = math.log %104 : vector<128x1xf32>
    %106 = arith.addf %105, %99 : vector<128x1xf32>
    %107 = vector.broadcast %106 : vector<128x1xf32> to vector<128x128xf32>
    %108 = arith.subf %97, %107 : vector<128x128xf32>
    %c0_65 = arith.constant 0 : index
    %c0_66 = arith.constant 0 : index
    %109 = vector.load %arg12[%c0_65, %c0_66] : memref<128x128xf32, #tpu.memory_space<vmem>>, vector<128x128xf32>
    tpu.vector_store %arg12[%c0_65, %c0_66], %108 {strides = array<i32>} : memref<128x128xf32, #tpu.memory_space<vmem>>, vector<128x128xf32>,
    return
  }
}

</mosaic_0001>

<bundles_post_ra>
// kernel: net_forward.1
= control target key start
LH: loop header
LB: loop body
LE: loop exit
PB: predicated region body
PF: predicated region fallthrough
CT: control target
= control target key end

     0   :  { %17 = vsyncpa [#allocation3], 0  ;;  %s4004_s0 = inlined_call_operand.vmem [shape: f32[128,16], index: 0, kind: input, shape index: {}]   ;;  %s4005_s1 = inlined_call_operand.vmem [shape: s8[128,128], index: 1, kind: input, shape index: {}]   ;;  %s4006_s2 = inlined_call_operand.vmem [shape: bf16[16,32], index: 2, kind: input, shape index: {}]   ;;  %s4007_s3 = inlined_call_operand.hbm [shape: f32[1,32], index: 3, kind: input, shape index: {}]   ;;  %s4008_s4 = inlined_call_operand.vmem [shape: bf16[2,32,32], index: 4, kind: input, shape index: {}]   ;;  %s4009_s5 = inlined_call_operand.vmem [shape: f32[2,1,32], index: 5, kind: input, shape index: {}]   ;;  %s4010_s6 = inlined_call_operand.vmem [shape: bf16[2,32,32], index: 6, kind: input, shape index: {}]   ;;  %s4011_s7 = inlined_call_operand.hbm [shape: f32[2,1,32], index: 7, kind: input, shape index: {}]   ;;  %s4012_s8 = inlined_call_operand.vmem [shape: bf16[2,32,32], index: 8, kind: input, shape index: {}]   ;;  %s4013_s9 = inlined_call_operand.vmem [shape: f32[2,1,32], index: 9, kind: input, shape index: {}]   ;;  %s4014_s10 = inlined_call_operand.vmem [shape: bf16[32,128], index: 10, kind: input, shape index: {}]   ;;  %s4015_s11 = inlined_call_operand.vmem [shape: f32[1,128], index: 11, kind: input, shape index: {}]   ;;  %s4016_s12 = inlined_call_operand.hbm [shape: f32[128,128], index: 12, kind: output, shape index: {}]  }
   0x1   :  { %18 = vsyncpa [#allocation6], 0 }
   0x2   :  { %19 = vsyncpa [#allocation4], 0  ;;  %s3120_s21 = smov [#allocation2]   ;;  %s3121_s23 = smov [#allocation5]  }
   0x3   :  { %s32_s22 = sshll.u32 %s3120_s21, 4  ;;  %s47_s24 = sshll.u32 %s3121_s23, 4  ;;  %s33_s22 = int_to_ptr.vmem [resolvable:$true] %s32_s22  ;;  %s3193_s24 = int_to_ptr.vmem [resolvable:$true] %s47_s24 }
   0x4   :  { %s3048_s27 = scalar_lea.hbm %s4007_s3, 16 }
   0x5   :  { %p3049_p0 = scmp.ne.s32.totalorder %s4007_s3, %s3048_s27  ;;  %p3052_p1 = scmp.lt.u32.totalorder %s3048_s27, %s4007_s3 }
   0x7   :  { %p3054_p2 = pnand %p3052_p1, %p3049_p0 }
   0x9   :  { %3057 = shalt.err (!%p3054_p2)
}
   0xa   :  { %s3058_s14 = scalar_lea.vmem %s33_s22, 16  ;;  %s3062_s15 = scalar_lea.vmem %s33_s22, 32 }
   0xb   :  { %p3059_p3 = scmp.ne.s32.totalorder %s33_s22, %s3058_s14  ;;  %p3063_p4 = scmp.lt.s32.totalorder %s33_s22, %s33_s22 }
   0xc   :  { %p3064_p5 = scmp.lt.s32.totalorder %s3062_s15, %s3058_s14 }
   0xe   :  { %p3065_p6 = por %p3064_p5, %p3063_p4 }
  0x10   :  { %p3066_p7 = pnand %p3065_p6, %p3059_p3 }
  0x12   :  { %3069 = shalt.err (!%p3066_p7)
}
  0x13   :  { %35 = dma.hbm_to_vmem [thread:$0]  %s4007_s3, 16, %s33_s22, [#allocation3]  }
  0x14   :  { %s3070_s20 = scalar_lea.hbm %s4011_s7, 32 }
  0x15   :  { %p3071_p8 = scmp.ne.s32.totalorder %s4011_s7, %s3070_s20  ;;  %p3074_p9 = scmp.lt.u32.totalorder %s3070_s20, %s4011_s7 }
  0x17   :  { %p3076_p10 = pnand %p3074_p9, %p3071_p8 }
  0x19   :  { %3079 = shalt.err (!%p3076_p10)
}
  0x1a   :  { %s3080_s27 = scalar_lea.vmem %s3193_s24, 32  ;;  %p3085_p12 = scmp.lt.s32.totalorder %s3193_s24, %s3193_s24 }
  0x1b   :  { %p3081_p11 = scmp.ne.s32.totalorder %s3193_s24, %s3080_s27  ;;  %p3086_p13 = scmp.lt.s32.totalorder %s3080_s27, %s3080_s27 }
  0x1d   :  { %p3087_p0 = por %p3086_p13, %p3085_p12 }
  0x1f   :  { %p3088_p1 = pnand %p3087_p0, %p3081_p11 }
  0x21   :  { %3091 = shalt.err (!%p3088_p1)
}
  0x22   :  { %s3122_s3 = smov 16   ;;  %s3123_s22 = smov 1  }
  0x23   :  { %53 = dma.hbm_to_vmem [thread:$0]  %s4011_s7, 32, %s3193_s24, [#allocation6], %s3122_s3, %s3122_s3, %s3123_s22  }
  0x24   :  { %3114 = dma.done.wait [#allocation3], 16  }
  0x25   :  { %3115 = vsyncadd [#allocation3], 4294967280 }
  0x26   :  { %3116 = dma.done.wait [#allocation6], 32  }
  0x27   :  { %3117 = vsyncadd [#allocation6], 4294967264  ;;  %v2841_v0 = vld [vmem:[%s4006_s2] sm:$0xff]   ;;  %v122_v2 = vld [vmem:[%s4004_s0 + $0x8] sm:$0xff]  ;;  %vm160_vm0 = vcmask 130048   ;;  %vm313_vm1 = vcmask 261120  }
  0x28   :  { %v121_v1 = vld [vmem:[%s4004_s0] sm:$0xff]  ;;  %v123_v3 = vld [vmem:[%s4004_s0 + $0x10] sm:$0xff]  ;;  %2531 = vmatprep.subr.bf16.mxu0 %v2841_v0  ;;  %v124_v5 = vld [vmem:[%s4004_s0 + $0x18] sm:$0xff] }
  0x29   :  { %v137_v4 = vpack.c.bf16 %v122_v2, %v121_v1  ;;  %v125_v6 = vld [vmem:[%s4004_s0 + $0x20] sm:$0xff]  ;;  %v126_v7 = vld [vmem:[%s4004_s0 + $0x28] sm:$0xff]  ;;  %2532 = vmatpush3.bf16.msra.mxu0 %v2841_v0  ;;  %v138_v8 = vpack.c.bf16 %v124_v5, %v123_v3  ;;  %v127_v10 = vld [vmem:[%s4004_s0 + $0x30] sm:$0xff] }
  0x2a   :  { %v139_v9 = vpack.c.bf16 %v126_v7, %v125_v6  ;;  %v128_v11 = vld [vmem:[%s4004_s0 + $0x38] sm:$0xff]  ;;  %v129_v12 = vld [vmem:[%s4004_s0 + $0x40] sm:$0xff]  ;;  %v130_v13 = vld [vmem:[%s4004_s0 + $0x48] sm:$0xff] }
  0x2b   :  { %2533 = vmatprep.mubr.msk.bf16.mxu0 %vm160_vm0, %v137_v4  ;;  %v2842_v14 = vld [vmem:[%s4010_s6] sm:$0xff]   ;;  %v2843_v15 = vld [vmem:[%s4010_s6 + $0x8] sm:$0xff]   ;;  %v140_v16 = vpack.c.bf16 %v128_v11, %v127_v10  ;;  %v141_v17 = vpack.c.bf16 %v130_v13, %v129_v12  ;;  %v131_v18 = vld [vmem:[%s4004_s0 + $0x50] sm:$0xff] }
  0x2c   :  { %2534 = vmatmul.mubr.msk.bf16.vlgmr.msra.gmra.mrb[0].mxu0 %vm160_vm0, %v138_v8  ;;  %2569 = vmatprep.subr.bf16.mxu0 %v2842_v14  ;;  %v132_v19 = vld [vmem:[%s4004_s0 + $0x58] sm:$0xff]  ;;  %v133_v20 = vld [vmem:[%s4004_s0 + $0x60] sm:$0xff]  ;;  %v134_v21 = vld [vmem:[%s4004_s0 + $0x68] sm:$0xff] }
  0x2d   :  { %2537 = vmatprep.mubr.msk.bf16.mxu0 %vm160_vm0, %v139_v9  ;;  %2570 = vmatpush3.bf16.msra.mxu0 %v2842_v14  ;;  %v142_v22 = vpack.c.bf16 %v132_v19, %v131_v18  ;;  %v143_v23 = vpack.c.bf16 %v134_v21, %v133_v20  ;;  %v135_v24 = vld [vmem:[%s4004_s0 + $0x70] sm:$0xff]  ;;  %v136_v25 = vld [vmem:[%s4004_s0 + $0x78] sm:$0xff]  ;;  %v2844_v27 = vld [vmem:[%s4008_s4] sm:$0xff]  }
  0x2e   :  { %2571 = vmatprep.subr.bf16.mxu0 %v2843_v15  ;;  %v144_v26 = vpack.c.bf16 %v136_v25, %v135_v24  ;;  %2549 = vmatprep.subr.bf16.mxu1 %v2844_v27  ;;  %v2845_v28 = vld [vmem:[%s4008_s4 + $0x8] sm:$0xff]   ;;  %v2846_v29 = vld [vmem:[%s4012_s8] sm:$0xff]  }
  0x2f   :  { %2550 = vmatpush3.bf16.msra.mxu1 %v2844_v27  ;;  %v2271_v31 = vld [vmem:[#allocation2] ss:$0 sm:$0xff]  ;;  %v2847_v41 = vld [vmem:[%s4012_s8 + $0x8] sm:$0xff]   ;;  %v3330_v11 = vld [vmem:[#allocation5] ss:$0 sm:$0xff] }
  0x30   :  { %2551 = vmatprep.subr.bf16.mxu1 %v2845_v28  ;;  %v3328_v8 = vld [vmem:[%s4009_s5] ss:$0 sm:$0xff] }
  0x31   :  { %2572 = vmatpush3.bf16.msra.mxu0 %v2843_v15 }
  0x33   :  { %2552 = vmatpush3.bf16.msra.mxu1 %v2845_v28 }
  0x34   :  { %2538 = vmatmul.mubr.msk.bf16.gmra.mrb[4].mxu0 %vm160_vm0, %v140_v16  ;;  %2589 = vmatprep.subr.bf16.mxu1 %v2846_v29 }
  0x35   :  { %2541 = vmatprep.mubr.msk.bf16.mxu0 %vm160_vm0, %v141_v17 }
  0x3c   :  { %2542 = vmatmul.mubr.msk.bf16.gmra.mrb[8].mxu0 %vm160_vm0, %v142_v22 }
  0x3d   :  { %2545 = vmatprep.mubr.msk.bf16.mxu0 %vm160_vm0, %v143_v23 }
  0x44   :  { %2546 = vmatmul.mubr.msk.bf16.gmra.mrb[12].mxu0 %vm160_vm0, %v144_v26 }
  0xff   :  { %v2535_v30 = vpop.f32.mrb[0].mxu0 }
 0x100   :  { %v219_v32 = vpop.f32.mrb[1].mxu0  ;;  %v228_v34 = vadd.f32 %v2535_v30, %v2271_v31 }
 0x101   :  { %v2536_v33 = vpop.f32.mrb[2].mxu0  ;;  %v220_v37 = vadd.f32 %v2271_v31, %v219_v32 }
 0x102   :  { %v231_v35 = vadd.f32 %v2536_v33, %v2271_v31  ;;  %v222_v36 = vpop.f32.mrb[3].mxu0 }
 0x103   :  { %v223_v38 = vadd.f32 %v2271_v31, %v222_v36 }
 0x104   :  { %v283_v39 = vpack.c.bf16 %v231_v35, %v228_v34 }
 0x105   :  { %v282_v40 = vpack.c.bf16 %v223_v38, %v220_v37 }
 0x107   :  { %v2539_v42 = vpop.f32.mrb[4].mxu0  ;;  %2553 = vmatprep.mubr.msk.bf16.mxu1 %vm313_vm1, %v282_v40  ;;  %2573 = vmatprep.mubr.msk.bf16.mxu0 %vm313_vm1, %v282_v40 }
 0x108   :  { %v244_v43 = vadd.f32 %v2539_v42, %v2271_v31  ;;  %v235_v44 = vpop.f32.mrb[5].mxu0  ;;  %2554 = vmatmul.mubr.msk.bf16.vlgmr.msra.gmra.mrb[0].mxu1 %vm313_vm1, %v283_v39  ;;  %2574 = vmatmul.mubr.msk.bf16.vlgmr.msra.gmra.mrb[16].mxu0 %vm313_vm1, %v283_v39 }
 0x109   :  { %v236_v45 = vadd.f32 %v2271_v31, %v235_v44  ;;  %v2540_v46 = vpop.f32.mrb[6].mxu0  ;;  %2590 = vmatpush3.bf16.msra.mxu1 %v2846_v29 }
 0x10a   :  { %v247_v47 = vadd.f32 %v2540_v46, %v2271_v31  ;;  %v238_v48 = vpop.f32.mrb[7].mxu0  ;;  %2591 = vmatprep.subr.bf16.mxu1 %v2847_v41 }
 0x10b   :  { %v239_v49 = vadd.f32 %v2271_v31, %v238_v48 }
 0x10c   :  { %v285_v50 = vpack.c.bf16 %v247_v47, %v244_v43 }
 0x10d   :  { %v284_v51 = vpack.c.bf16 %v239_v49, %v236_v45  ;;  %2592 = vmatpush3.bf16.msra.mxu1 %v2847_v41 }
 0x10f   :  { %v2543_v52 = vpop.f32.mrb[8].mxu0  ;;  %2557 = vmatprep.mubr.msk.bf16.mxu1 %vm313_vm1, %v284_v51  ;;  %2577 = vmatprep.mubr.msk.bf16.mxu0 %vm313_vm1, %v284_v51 }
 0x110   :  { %v260_v53 = vadd.f32 %v2543_v52, %v2271_v31  ;;  %v251_v54 = vpop.f32.mrb[9].mxu0  ;;  %2558 = vmatmul.mubr.msk.bf16.gmra.mrb[4].mxu1 %vm313_vm1, %v285_v50  ;;  %2578 = vmatmul.mubr.msk.bf16.gmra.mrb[20].mxu0 %vm313_vm1, %v285_v50 }
 0x111   :  { %v252_v55 = vadd.f32 %v2271_v31, %v251_v54  ;;  %v2544_v56 = vpop.f32.mrb[10].mxu0 }
 0x112   :  { %v263_v57 = vadd.f32 %v2544_v56, %v2271_v31  ;;  %v254_v58 = vpop.f32.mrb[11].mxu0 }
 0x113   :  { %v255_v59 = vadd.f32 %v2271_v31, %v254_v58 }
 0x114   :  { %v287_v60 = vpack.c.bf16 %v263_v57, %v260_v53 }
 0x115   :  { %v286_v61 = vpack.c.bf16 %v255_v59, %v252_v55 }
 0x117   :  { %v2547_v62 = vpop.f32.mrb[12].mxu0  ;;  %2561 = vmatprep.mubr.msk.bf16.mxu1 %vm313_vm1, %v286_v61  ;;  %2581 = vmatprep.mubr.msk.bf16.mxu0 %vm313_vm1, %v286_v61 }
 0x118   :  { %v276_v63 = vadd.f32 %v2547_v62, %v2271_v31  ;;  %v267_v0 = vpop.f32.mrb[13].mxu0  ;;  %2562 = vmatmul.mubr.msk.bf16.gmra.mrb[8].mxu1 %vm313_vm1, %v287_v60  ;;  %2582 = vmatmul.mubr.msk.bf16.gmra.mrb[24].mxu0 %vm313_vm1, %v287_v60 }
 0x119   :  { %v268_v1 = vadd.f32 %v2271_v31, %v267_v0  ;;  %v2548_v2 = vpop.f32.mrb[14].mxu0 }
 0x11a   :  { %v279_v3 = vadd.f32 %v2548_v2, %v2271_v31  ;;  %v270_v4 = vpop.f32.mrb[15].mxu0 }
 0x11b   :  { %v271_v5 = vadd.f32 %v2271_v31, %v270_v4 }
 0x11c   :  { %v289_v6 = vpack.c.bf16 %v279_v3, %v276_v63 }
 0x11d   :  { %v288_v7 = vpack.c.bf16 %v271_v5, %v268_v1 }
 0x11f   :  { %2565 = vmatprep.mubr.msk.bf16.mxu1 %vm313_vm1, %v288_v7  ;;  %2585 = vmatprep.mubr.msk.bf16.mxu0 %vm313_vm1, %v288_v7 }
 0x120   :  { %2566 = vmatmul.mubr.msk.bf16.gmra.mrb[12].mxu1 %vm313_vm1, %v289_v6  ;;  %2586 = vmatmul.mubr.msk.bf16.gmra.mrb[28].mxu0 %vm313_vm1, %v289_v6 }
 0x121   :  { %2593 = vmatprep.mubr.msk.bf16.mxu1 %vm313_vm1, %v282_v40 }
 0x128   :  { %2594 = vmatmul.mubr.msk.bf16.vlgmr.msra.gmra.mrb[16].mxu1 %vm313_vm1, %v283_v39 }
 0x129   :  { %2597 = vmatprep.mubr.msk.bf16.mxu1 %vm313_vm1, %v284_v51 }
 0x130   :  { %2598 = vmatmul.mubr.msk.bf16.gmra.mrb[20].mxu1 %vm313_vm1, %v285_v50 }
 0x131   :  { %2601 = vmatprep.mubr.msk.bf16.mxu1 %vm313_vm1, %v286_v61 }
 0x138   :  { %2602 = vmatmul.mubr.msk.bf16.gmra.mrb[24].mxu1 %vm313_vm1, %v287_v60 }
 0x139   :  { %2605 = vmatprep.mubr.msk.bf16.mxu1 %vm313_vm1, %v288_v7 }
 0x140   :  { %2606 = vmatmul.mubr.msk.bf16.gmra.mrb[28].mxu1 %vm313_vm1, %v289_v6 }
 0x1db   :  { %v2555_v9 = vpop.f32.mrb[0].mxu1  ;;  %v2575_v10 = vpop.f32.mrb[16].mxu0 }
 0x1dc   :  { %v3333_v12 = vadd.f32 %v2555_v9, %v3328_v8  ;;  %v372_v13 = vpop.f32.mrb[1].mxu1  ;;  %v492_v14 = vpop.f32.mrb[17].mxu0  ;;  %v501_v17 = vadd.f32 %v2575_v10, %v3330_v11 }
 0x1dd   :  { %v2556_v15 = vpop.f32.mrb[2].mxu1  ;;  %v2576_v16 = vpop.f32.mrb[18].mxu0  ;;  %v373_v22 = vadd.f32 %v3328_v8, %v372_v13  ;;  %v493_v23 = vadd.f32 %v3330_v11, %v492_v14 }
 0x1de   :  { %v3337_v18 = vadd.f32 %v2556_v15, %v3328_v8  ;;  %v504_v19 = vadd.f32 %v2576_v16, %v3330_v11  ;;  %v375_v20 = vpop.f32.mrb[3].mxu1  ;;  %v495_v21 = vpop.f32.mrb[19].mxu0 }
 0x1df   :  { %v376_v24 = vadd.f32 %v3328_v8, %v375_v20  ;;  %v496_v25 = vadd.f32 %v3330_v11, %v495_v21 }
 0x1e0   :  { %v676_v26 = vpack.c.bf16 %v3337_v18, %v3333_v12  ;;  %v684_v27 = vpack.c.bf16 %v504_v19, %v501_v17  ;;  %v69_v12 = vld [vmem:[%s4005_s1] sm:$0xff] }
 0x1e1   :  { %v675_v28 = vpack.c.bf16 %v376_v24, %v373_v22  ;;  %v683_v29 = vpack.c.bf16 %v496_v25, %v493_v23  ;;  %v75_v18 = vunpack.c.2.s8 %v69_v12 }
 0x1e2   :  { %v719_v51 = vsel %vm313_vm1, %v684_v27, 0 }
 0x1e3   :  { %2817 = vmatprep.subr.msk.bf16.mxu0 %vm313_vm1, %v683_v29  ;;  %2625 = vmatprep.mubr.msk.bf16.mxu0 %vm313_vm1, %v675_v28  ;;  %v2559_v30 = vpop.f32.mrb[4].mxu1  ;;  %v2579_v31 = vpop.f32.mrb[20].mxu0  ;;  %v716_v32 = vsel %vm313_vm1, %v683_v29, 0  ;;  %vm91_vm2 = vcmp.gt.s32.totalorder %v75_v18, 0 }
 0x1e4   :  { %v3350_v33 = vadd.f32 %v2559_v30, %v3328_v8  ;;  %v517_v34 = vadd.f32 %v2579_v31, %v3330_v11  ;;  %2610 = vmatpush3.bf16.xpose.msra.mxu0 %v716_v32  ;;  %v388_v35 = vpop.f32.mrb[5].mxu1  ;;  %v508_v36 = vpop.f32.mrb[21].mxu0 }
 0x1e5   :  { %v3354_v37 = vadd.f32 %v3328_v8, %v388_v35  ;;  %v509_v38 = vadd.f32 %v3330_v11, %v508_v36  ;;  %2818 = vmatprep.subr.msk.bf16.mxu0 %vm313_vm1, %v684_v27  ;;  %v2560_v39 = vpop.f32.mrb[6].mxu1  ;;  %v2580_v40 = vpop.f32.mrb[22].mxu0  ;;  %v2303_v36 = vld [vmem:[%s4013_s9] ss:$0 sm:$0xff] }
 0x1e6   :  { %v3359_v41 = vadd.f32 %v2560_v39, %v3328_v8  ;;  %v520_v42 = vadd.f32 %v2580_v40, %v3330_v11  ;;  %v391_v43 = vpop.f32.mrb[7].mxu1  ;;  %v511_v44 = vpop.f32.mrb[23].mxu0 }
 0x1e7   :  { %v3363_v45 = vadd.f32 %v3328_v8, %v391_v43  ;;  %v512_v46 = vadd.f32 %v3330_v11, %v511_v44 }
 0x1e8   :  { %v678_v47 = vpack.c.bf16 %v3359_v41, %v3350_v33  ;;  %v686_v48 = vpack.c.bf16 %v520_v42, %v517_v34  ;;  %v76_v33 = vunpack.c.3.s8 %v69_v12  ;;  %v70_v41 = vld [vmem:[%s4005_s1 + $0x8] sm:$0xff] }
 0x1e9   :  { %v677_v49 = vpack.c.bf16 %v3363_v45, %v3354_v37  ;;  %v685_v50 = vpack.c.bf16 %v512_v46, %v509_v38  ;;  %v74_v37 = vunpack.c.1.s8 %v69_v12  ;;  %v3124_v45 = vmov -1e+30  }
 0x1ea   :  { %v725_v38 = vsel %vm313_vm1, %v686_v48, 0  ;;  %vm92_vm4 = vcmp.gt.s32.totalorder %v76_v33, 0 }
 0x1eb   :  { %v2563_v52 = vpop.f32.mrb[8].mxu1  ;;  %v2583_v53 = vpop.f32.mrb[24].mxu0  ;;  %v722_v9 = vsel %vm313_vm1, %v685_v50, 0  ;;  %vm90_vm5 = vcmp.gt.s32.totalorder %v74_v37, 0 }
 0x1ec   :  { %2612 = vmatpush3.bf16.xpose.msra.mxu0 %v719_v51  ;;  %v3372_v54 = vadd.f32 %v2563_v52, %v3328_v8  ;;  %v404_v55 = vpop.f32.mrb[9].mxu1  ;;  %v533_v56 = vadd.f32 %v2583_v53, %v3330_v11  ;;  %v524_v57 = vpop.f32.mrb[25].mxu0 }
 0x1ed   :  { %2819 = vmatprep.subr.msk.bf16.mxu0 %vm313_vm1, %v685_v50  ;;  %v3377_v58 = vadd.f32 %v3328_v8, %v404_v55  ;;  %v2564_v59 = vpop.f32.mrb[10].mxu1  ;;  %v525_v60 = vadd.f32 %v3330_v11, %v524_v57  ;;  %v2584_v61 = vpop.f32.mrb[26].mxu0 }
 0x1ee   :  { %v3381_v62 = vadd.f32 %v2564_v59, %v3328_v8  ;;  %v407_v63 = vpop.f32.mrb[11].mxu1  ;;  %v536_v0 = vadd.f32 %v2584_v61, %v3330_v11  ;;  %v527_v1 = vpop.f32.mrb[27].mxu0 }
 0x1ef   :  { %v3385_v2 = vadd.f32 %v3328_v8, %v407_v63  ;;  %v528_v3 = vadd.f32 %v3330_v11, %v527_v1 }
 0x1f0   :  { %v680_v4 = vpack.c.bf16 %v3381_v62, %v3372_v54  ;;  %v688_v5 = vpack.c.bf16 %v536_v0, %v533_v56 }
 0x1f1   :  { %v679_v6 = vpack.c.bf16 %v3385_v2, %v3377_v58  ;;  %v687_v7 = vpack.c.bf16 %v528_v3, %v525_v60  ;;  %v77_v58 = vunpack.c.0.s8 %v70_v41 }
 0x1f2   :  { %v731_v1 = vsel %vm313_vm1, %v688_v5, 0 }
 0x1f3   :  { %v2567_v10 = vpop.f32.mrb[12].mxu1  ;;  %v2587_v13 = vpop.f32.mrb[28].mxu0  ;;  %v728_v52 = vsel %vm313_vm1, %v687_v7, 0  ;;  %vm93_vm6 = vcmp.gt.s32.totalorder %v77_v58, 0 }
 0x1f4   :  { %2614 = vmatpush3.bf16.xpose.msra.mxu0 %v722_v9  ;;  %v3394_v14 = vadd.f32 %v2567_v10, %v3328_v8  ;;  %v420_v15 = vpop.f32.mrb[13].mxu1  ;;  %v549_v16 = vadd.f32 %v2587_v13, %v3330_v11  ;;  %v540_v17 = vpop.f32.mrb[29].mxu0 }
 0x1f5   :  { %2820 = vmatprep.subr.msk.bf16.mxu0 %vm313_vm1, %v686_v48  ;;  %v3399_v19 = vadd.f32 %v3328_v8, %v420_v15  ;;  %v2568_v20 = vpop.f32.mrb[14].mxu1  ;;  %v541_v21 = vadd.f32 %v3330_v11, %v540_v17  ;;  %v2588_v22 = vpop.f32.mrb[30].mxu0 }
 0x1f6   :  { %v3403_v23 = vadd.f32 %v2568_v20, %v3328_v8  ;;  %v423_v24 = vpop.f32.mrb[15].mxu1  ;;  %v552_v25 = vadd.f32 %v2588_v22, %v3330_v11  ;;  %v543_v27 = vpop.f32.mrb[31].mxu0 }
 0x1f7   :  { %v3407_v28 = vadd.f32 %v3328_v8, %v423_v24  ;;  %v544_v29 = vadd.f32 %v3330_v11, %v543_v27 }
 0x1f8   :  { %v682_v30 = vpack.c.bf16 %v3403_v23, %v3394_v14  ;;  %v3412_v31 = vpack.c.bf16 %v552_v25, %v549_v16  ;;  %v3480_v23 = vsel %vm90_vm5, 0.0, %v3124_v45 }
 0x1f9   :  { %v681_v32 = vpack.c.bf16 %v3407_v28, %v3399_v19  ;;  %v689_v34 = vpack.c.bf16 %v544_v29, %v541_v21  ;;  %v78_v19 = vunpack.c.1.s8 %v70_v41 }
 0x1fb   :  { %v2595_v35 = vpop.f32.mrb[16].mxu1  ;;  %v734_v22 = vsel %vm313_vm1, %v689_v34, 0  ;;  %vm94_vm7 = vcmp.gt.s32.totalorder %v78_v19, 0 }
 0x1fc   :  { %v612_v8 = vpop.f32.mrb[17].mxu1  ;;  %2616 = vmatpush3.bf16.xpose.msra.mxu0 %v725_v38  ;;  %v621_v11 = vadd.f32 %v2595_v35, %v2303_v36 }
 0x1fd   :  { %v2596_v39 = vpop.f32.mrb[18].mxu1  ;;  %2821 = vmatprep.subr.msk.bf16.mxu0 %vm313_vm1, %v687_v7  ;;  %v613_v43 = vadd.f32 %v2303_v36, %v612_v8 }
 0x1fe   :  { %v624_v40 = vadd.f32 %v2596_v39, %v2303_v36  ;;  %v615_v42 = vpop.f32.mrb[19].mxu1 }
 0x1ff   :  { %v616_v44 = vadd.f32 %v2303_v36, %v615_v42 }
 0x200   :  { %v957_v46 = vpack.c.bf16 %v624_v40, %v621_v11  ;;  %v80_v11 = vunpack.c.3.s8 %v70_v41  ;;  %v3495_v40 = vsel %vm93_vm6, 0.0, %v3124_v45 }
 0x201   :  { %v956_v50 = vpack.c.bf16 %v616_v44, %v613_v43 }
 0x202   :  { %vm96_vm9 = vcmp.gt.s32.totalorder %v80_v11, 0 }
 0x203   :  { %v2599_v51 = vpop.f32.mrb[20].mxu1  ;;  %2641 = vmatprep.subr.bf16.mxu1 %v956_v50 }
 0x204   :  { %v628_v53 = vpop.f32.mrb[21].mxu1  ;;  %2618 = vmatpush3.bf16.xpose.msra.mxu0 %v728_v52  ;;  %2642 = vmatpush3.bf16.msra.mxu1 %v956_v50  ;;  %v637_v55 = vadd.f32 %v2599_v51, %v2303_v36 }
 0x205   :  { %v2600_v48 = vpop.f32.mrb[22].mxu1  ;;  %2822 = vmatprep.subr.msk.bf16.mxu0 %vm313_vm1, %v688_v5  ;;  %2643 = vmatprep.subr.bf16.mxu1 %v957_v46  ;;  %v629_v59 = vadd.f32 %v2303_v36, %v628_v53 }
 0x206   :  { %v640_v56 = vadd.f32 %v2600_v48, %v2303_v36  ;;  %v631_v57 = vpop.f32.mrb[23].mxu1 }
 0x207   :  { %v632_v60 = vadd.f32 %v2303_v36, %v631_v57  ;;  %v3512_v57 = vsel %vm96_vm9, 0.0, %v3124_v45 }
 0x208   :  { %v959_v61 = vpack.c.bf16 %v640_v56, %v637_v55  ;;  %2644 = vmatpush3.bf16.msra.mxu1 %v957_v46  ;;  %v3499_v46 = vsel %vm94_vm7, 0.0, %v3124_v45 }
 0x209   :  { %v958_v63 = vpack.c.bf16 %v632_v60, %v629_v59  ;;  %v72_v59 = vld [vmem:[%s4005_s1 + $0x18] sm:$0xff] }
 0x20b   :  { %v2603_v0 = vpop.f32.mrb[24].mxu1  ;;  %2645 = vmatprep.subr.bf16.mxu1 %v958_v63 }
 0x20c   :  { %v644_v3 = vpop.f32.mrb[25].mxu1  ;;  %2620 = vmatpush3.bf16.xpose.msra.mxu0 %v731_v1  ;;  %2646 = vmatpush3.bf16.msra.mxu1 %v958_v63  ;;  %v653_v9 = vadd.f32 %v2603_v0, %v2303_v36 }
 0x20d   :  { %v2604_v7 = vpop.f32.mrb[26].mxu1  ;;  %2823 = vmatprep.subr.msk.bf16.mxu0 %vm313_vm1, %v689_v34  ;;  %2647 = vmatprep.subr.bf16.mxu1 %v959_v61  ;;  %v645_v15 = vadd.f32 %v2303_v36, %v644_v3  ;;  %v737_v34 = vsel %vm313_vm1, %v3412_v31, 0  ;;  %v85_v3 = vunpack.c.0.s8 %v72_v59 }
 0x20e   :  { %v656_v10 = vadd.f32 %v2604_v7, %v2303_v36  ;;  %v647_v13 = vpop.f32.mrb[27].mxu1 }
 0x20f   :  { %v648_v16 = vadd.f32 %v2303_v36, %v647_v13  ;;  %vm101_vm14 = vcmp.gt.s32.totalorder %v85_v3, 0 }
 0x210   :  { %v961_v17 = vpack.c.bf16 %v656_v10, %v653_v9  ;;  %2648 = vmatpush3.bf16.msra.mxu1 %v959_v61 }
 0x211   :  { %v960_v20 = vpack.c.bf16 %v648_v16, %v645_v15  ;;  %v86_v15 = vunpack.c.1.s8 %v72_v59 }
 0x213   :  { %v2607_v21 = vpop.f32.mrb[28].mxu1  ;;  %2649 = vmatprep.subr.bf16.mxu1 %v960_v20  ;;  %vm102_vm15 = vcmp.gt.s32.totalorder %v86_v15, 0 }
 0x214   :  { %v660_v5 = vpop.f32.mrb[29].mxu1  ;;  %2622 = vmatpush3.bf16.xpose.msra.mxu0 %v734_v22  ;;  %2650 = vmatpush3.bf16.msra.mxu1 %v960_v20  ;;  %v669_v25 = vadd.f32 %v2607_v21, %v2303_v36  ;;  %v87_v21 = vunpack.c.2.s8 %v72_v59 }
 0x215   :  { %v2608_v24 = vpop.f32.mrb[30].mxu1  ;;  %2824 = vmatprep.subr.msk.bf16.mxu0 %vm313_vm1, %v3412_v31  ;;  %2651 = vmatprep.subr.bf16.mxu1 %v961_v17  ;;  %v661_v35 = vadd.f32 %v2303_v36, %v660_v5 }
 0x216   :  { %v672_v27 = vadd.f32 %v2608_v24, %v2303_v36  ;;  %v663_v29 = vpop.f32.mrb[31].mxu1  ;;  %v88_v24 = vunpack.c.3.s8 %v72_v59  ;;  %vm103_vm0 = vcmp.gt.s32.totalorder %v87_v21, 0 }
 0x217   :  { %v664_v38 = vadd.f32 %v2303_v36, %v663_v29 }
 0x218   :  { %v963_v8 = vpack.c.bf16 %v672_v27, %v669_v25  ;;  %2652 = vmatpush3.bf16.msra.mxu1 %v961_v17  ;;  %v3550_v25 = vsel %vm101_vm14, 0.0, %v3124_v45 }
 0x219   :  { %v962_v39 = vpack.c.bf16 %v664_v38, %v661_v35  ;;  %v3557_v38 = vsel %vm102_vm15, 0.0, %v3124_v45 }
 0x21b   :  { %2653 = vmatprep.subr.bf16.mxu1 %v962_v39 }
 0x21c   :  { %2624 = vmatpush3.bf16.xpose.msra.mxu0 %v737_v34  ;;  %2654 = vmatpush3.bf16.msra.mxu1 %v962_v39  ;;  %v3564_v34 = vsel %vm103_vm0, 0.0, %v3124_v45 }
 0x21d   :  { %2655 = vmatprep.subr.bf16.mxu1 %v963_v8 }
 0x220   :  { %2656 = vmatpush3.bf16.msra.mxu1 %v963_v8 }
 0x223   :  { %2626 = vmatmul.mubr.msk.bf16.vlgmr.msra.gmra.mrb[32].mxu0 %vm313_vm1, %v676_v26  ;;  %v73_v26 = vunpack.c.0.s8 %v69_v12 }
 0x224   :  { %2629 = vmatprep.mubr.msk.bf16.mxu0 %vm313_vm1, %v677_v49 }
 0x225   :  { %vm89_vm3 = vcmp.gt.s32.totalorder %v73_v26, 0 }
 0x226   :  { %v3468_v49 = vsel %vm89_vm3, 0.0, %v3124_v45 }
 0x22b   :  { %2630 = vmatmul.mubr.msk.bf16.gmra.mrb[36].mxu0 %vm313_vm1, %v678_v47  ;;  %v3465_v47 = vsel %vm91_vm2, 0.0, %v3124_v45  ;;  %vm104_vm2 = vcmp.gt.s32.totalorder %v88_v24, 0 }
 0x22c   :  { %2633 = vmatprep.mubr.msk.bf16.mxu0 %vm313_vm1, %v679_v6  ;;  %v3477_v6 = vsel %vm92_vm4, 0.0, %v3124_v45  ;;  %v3571_v26 = vsel %vm104_vm2, 0.0, %v3124_v45 }
 0x233   :  { %2634 = vmatmul.mubr.msk.bf16.gmra.mrb[40].mxu0 %vm313_vm1, %v680_v4 }
 0x234   :  { %2637 = vmatprep.mubr.msk.bf16.mxu0 %vm313_vm1, %v681_v32  ;;  %v71_v32 = vld [vmem:[%s4005_s1 + $0x10] sm:$0xff] }
 0x235   :  { %v81_v43 = vunpack.c.0.s8 %v71_v32  ;;  %v82_v52 = vunpack.c.1.s8 %v71_v32  ;;  %v83_v56 = vunpack.c.2.s8 %v71_v32  ;;  %v84_v61 = vunpack.c.3.s8 %v71_v32 }
 0x237   :  { %vm97_vm10 = vcmp.gt.s32.totalorder %v81_v43, 0  ;;  %vm98_vm11 = vcmp.gt.s32.totalorder %v82_v52, 0  ;;  %vm99_vm12 = vcmp.gt.s32.totalorder %v83_v56, 0  ;;  %vm100_vm13 = vcmp.gt.s32.totalorder %v84_v61, 0 }
 0x238   :  { %v3522_v63 = vsel %vm97_vm10, 0.0, %v3124_v45  ;;  %v3529_v9 = vsel %vm98_vm11, 0.0, %v3124_v45  ;;  %v3536_v16 = vsel %vm99_vm12, 0.0, %v3124_v45  ;;  %v3543_v22 = vsel %vm100_vm13, 0.0, %v3124_v45 }
 0x23b   :  { %2638 = vmatmul.mubr.msk.bf16.gmra.mrb[44].mxu0 %vm313_vm1, %v682_v30  ;;  %v79_v30 = vunpack.c.2.s8 %v70_v41 }
 0x23d   :  { %vm95_vm8 = vcmp.gt.s32.totalorder %v79_v30, 0 }
 0x23e   :  { %v3505_v53 = vsel %vm95_vm8, 0.0, %v3124_v45 }
 0x2f6   :  { %v2627_v54 = vpop.f32.mrb[32].mxu0 }
 0x2f7   :  { %v3471_v62 = vadd.f32 %v2627_v54, %v3465_v47  ;;  %v773_v2 = vpop.f32.mrb[33].mxu0 }
 0x2f8   :  { %v3474_v4 = vadd.f32 %v773_v2, %v3468_v49  ;;  %v2628_v14 = vpop.f32.mrb[34].mxu0 }
 0x2f9   :  { %v776_v28 = vpop.f32.mrb[35].mxu0  ;;  %840 = vmax.xlane.f32.xlu1 %v3471_v62  ;;  %v3485_v31 = vadd.f32 %v2628_v14, %v3477_v6 }
 0x2fa   :  { %836 = vmax.xlane.f32.xlu0 %v3474_v4  ;;  %v3491_v36 = vadd.f32 %v776_v28, %v3480_v23 }
 0x2fd   :  { %842 = vmax.xlane.f32.xlu1 %v3485_v31 }
 0x2fe   :  { %v2631_v42 = vpop.f32.mrb[36].mxu0  ;;  %838 = vmax.xlane.f32.xlu0 %v3491_v36 }
 0x2ff   :  { %v789_v44 = vpop.f32.mrb[37].mxu0  ;;  %v3518_v60 = vadd.f32 %v2631_v42, %v3505_v53 }
 0x300   :  { %v3502_v50 = vadd.f32 %v789_v44, %v3495_v40  ;;  %v2632_v51 = vpop.f32.mrb[38].mxu0 }
 0x301   :  { %v792_v48 = vpop.f32.mrb[39].mxu0  ;;  %v3525_v0 = vadd.f32 %v2632_v51, %v3512_v57 }
 0x302   :  { %v3508_v55 = vadd.f32 %v792_v48, %v3499_v46  ;;  %844 = vmax.xlane.f32.xlu0 %v3502_v50 }
 0x304   :  { %846 = vmax.xlane.f32.xlu1 %v3508_v55 }
 0x306   :  { %v2635_v1 = vpop.f32.mrb[40].mxu0  ;;  %848 = vmax.xlane.f32.xlu0 %v3518_v60 }
 0x307   :  { %v805_v7 = vpop.f32.mrb[41].mxu0  ;;  %v3546_v5 = vadd.f32 %v2635_v1, %v3536_v16 }
 0x308   :  { %v3532_v10 = vadd.f32 %v805_v7, %v3522_v63  ;;  %v2636_v13 = vpop.f32.mrb[42].mxu0  ;;  %850 = vmax.xlane.f32.xlu1 %v3525_v0 }
 0x309   :  { %v808_v17 = vpop.f32.mrb[43].mxu0  ;;  %v3553_v27 = vadd.f32 %v2636_v13, %v3543_v22 }
 0x30a   :  { %v3539_v20 = vadd.f32 %v808_v17, %v3529_v9  ;;  %852 = vmax.xlane.f32.xlu0 %v3532_v10 }
 0x30c   :  { %854 = vmax.xlane.f32.xlu1 %v3539_v20 }
 0x30e   :  { %v2639_v29 = vpop.f32.mrb[44].mxu0  ;;  %856 = vmax.xlane.f32.xlu0 %v3546_v5 }
 0x30f   :  { %v821_v35 = vpop.f32.mrb[45].mxu0  ;;  %v3574_v33 = vadd.f32 %v2639_v29, %v3564_v34 }
 0x310   :  { %v3560_v8 = vadd.f32 %v821_v35, %v3550_v25  ;;  %v2640_v39 = vpop.f32.mrb[46].mxu0  ;;  %858 = vmax.xlane.f32.xlu1 %v3553_v27 }
 0x311   :  { %v824_v12 = vpop.f32.mrb[47].mxu0  ;;  %v3578_v37 = vadd.f32 %v2640_v39, %v3571_v26 }
 0x312   :  { %v3567_v18 = vadd.f32 %v824_v12, %v3557_v38  ;;  %860 = vmax.xlane.f32.xlu0 %v3560_v8 }
 0x314   :  { %862 = vmax.xlane.f32.xlu1 %v3567_v18 }
 0x316   :  { %864 = vmax.xlane.f32.xlu0 %v3574_v33 }
 0x318   :  { %866 = vmax.xlane.f32.xlu1 %v3578_v37 }
 0x386   :  { %v841_v41 = vpop.xlane.xlu1 %840 }
 0x387   :  { %v870_v54 = vsub.f32 %v3471_v62, %v841_v41  ;;  %v837_v58 = vpop.xlane.xlu0 %836 }
 0x388   :  { %v868_v2 = vsub.f32 %v3474_v4, %v837_v58 }
 0x389   :  { %v888_v45 = vmul.f32 1.442695, %v870_v54 }
 0x38a   :  { %v884_v14 = vmul.f32 1.442695, %v868_v2  ;;  %v843_v19 = vpop.xlane.xlu1 %842 }
 0x38b   :  { %v871_v28 = vsub.f32 %v3485_v31, %v843_v19  ;;  %v839_v30 = vpop.xlane.xlu0 %838 }
 0x38c   :  { %2856 = vpow2.f32 %v884_v14  ;;  %v869_v32 = vsub.f32 %v3491_v36, %v839_v30 }
 0x38d   :  { %v890_v11 = vmul.f32 1.442695, %v871_v28  ;;  %2858 = vpow2.f32 %v888_v45 }
 0x38e   :  { %v886_v42 = vmul.f32 1.442695, %v869_v32 }
 0x38f   :  { %2860 = vpow2.f32 %v890_v11  ;;  %v845_v43 = vpop.xlane.xlu0 %844 }
 0x390   :  { %2862 = vpow2.f32 %v886_v42  ;;  %v872_v62 = vsub.f32 %v3502_v50, %v845_v43 }
 0x391   :  { %v847_v44 = vpop.xlane.xlu1 %846 }
 0x392   :  { %v892_v51 = vmul.f32 1.442695, %v872_v62  ;;  %v873_v4 = vsub.f32 %v3508_v55, %v847_v44 }
 0x393   :  { %v849_v52 = vpop.xlane.xlu0 %848 }
 0x394   :  { %2864 = vpow2.f32 %v892_v51  ;;  %v894_v48 = vmul.f32 1.442695, %v873_v4  ;;  %v874_v31 = vsub.f32 %v3518_v60, %v849_v52 }
 0x395   :  { %v851_v56 = vpop.xlane.xlu1 %850 }
 0x396   :  { %v2857_v59 = vpop.eup %2856  ;;  %2866 = vpow2.f32 %v894_v48  ;;  %v896_v36 = vmul.f32 1.442695, %v874_v31  ;;  %v875_v61 = vsub.f32 %v3525_v0, %v851_v56 }
 0x397   :  { %916 = vadd.xlane.f32.xlu0 %v2857_v59  ;;  %v853_v1 = vpop.xlane.xlu0 %852  ;;  %v2859_v3 = vpop.eup %2858 }
 0x398   :  { %2868 = vpow2.f32 %v896_v36  ;;  %v898_v50 = vmul.f32 1.442695, %v875_v61  ;;  %v876_v7 = vsub.f32 %v3532_v10, %v853_v1  ;;  %v2848_v1 = vld [vmem:[%s4010_s6 + $0x10] sm:$0xff]  }
 0x399   :  { %v2861_v13 = vpop.eup %2860  ;;  %v855_v55 = vpop.xlane.xlu1 %854  ;;  %2693 = vmatprep.subr.bf16.mxu0 %v2848_v1 }
 0x39a   :  { %v2863_v15 = vpop.eup %2862  ;;  %2870 = vpow2.f32 %v898_v50  ;;  %v900_v17 = vmul.f32 1.442695, %v876_v7  ;;  %v877_v60 = vsub.f32 %v3539_v20, %v855_v55  ;;  %v949_v35 = vpack.c.bf16 %v2861_v13, %v2859_v3  ;;  %2694 = vmatpush3.bf16.msra.mxu0 %v2848_v1  ;;  %v2850_v50 = vld [vmem:[%s4008_s4 + $0x10] sm:$0xff]   ;;  %v2851_v7 = vld [vmem:[%s4008_s4 + $0x18] sm:$0xff]  }
 0x39b   :  { %920 = vadd.xlane.f32.xlu0 %v2859_v3  ;;  %918 = vadd.xlane.f32.xlu1 %v2863_v15  ;;  %v857_v21 = vpop.xlane.xlu0 %856  ;;  %v948_v24 = vpack.c.bf16 %v2863_v15, %v2857_v59  ;;  %v2849_v3 = vld [vmem:[%s4010_s6 + $0x18] sm:$0xff]  }
 0x39c   :  { %2872 = vpow2.f32 %v900_v17  ;;  %v902_v0 = vmul.f32 1.442695, %v877_v60  ;;  %v878_v29 = vsub.f32 %v3546_v5, %v857_v21  ;;  %2695 = vmatprep.subr.bf16.mxu0 %v2849_v3  ;;  %2673 = vmatprep.subr.bf16.mxu1 %v2850_v50 }
 0x39d   :  { %v859_v39 = vpop.xlane.xlu1 %858  ;;  %2657 = vmatprep.mubr.bf16.mxu1 %v948_v24 }
 0x39e   :  { %v2865_v12 = vpop.eup %2864  ;;  %2874 = vpow2.f32 %v902_v0  ;;  %v904_v10 = vmul.f32 1.442695, %v878_v29  ;;  %v879_v41 = vsub.f32 %v3553_v27, %v859_v39  ;;  %2658 = vmatmul.mubr.bf16.vlgmr.msra.gmra.mrb[32].mxu1 %v949_v35  ;;  %2696 = vmatpush3.bf16.msra.mxu0 %v2849_v3 }
 0x39f   :  { %922 = vadd.xlane.f32.xlu1 %v2861_v13  ;;  %924 = vadd.xlane.f32.xlu0 %v2865_v12  ;;  %v861_v20 = vpop.xlane.xlu0 %860  ;;  %v2852_v13 = vld [vmem:[%s4012_s8 + $0x10] sm:$0xff]  }
 0x3a0   :  { %v2867_v54 = vpop.eup %2866  ;;  %2876 = vpow2.f32 %v904_v10  ;;  %v906_v58 = vmul.f32 1.442695, %v879_v41  ;;  %v880_v2 = vsub.f32 %v3560_v8, %v861_v20  ;;  %2674 = vmatpush3.bf16.msra.mxu1 %v2850_v50 }
 0x3a1   :  { %v863_v45 = vpop.xlane.xlu1 %862  ;;  %v950_v14 = vpack.c.bf16 %v2867_v54, %v2865_v12  ;;  %2675 = vmatprep.subr.bf16.mxu1 %v2851_v7 }
 0x3a2   :  { %v2869_v5 = vpop.eup %2868  ;;  %2878 = vpow2.f32 %v906_v58  ;;  %v908_v19 = vmul.f32 1.442695, %v880_v2  ;;  %v881_v28 = vsub.f32 %v3567_v18, %v863_v45 }
 0x3a3   :  { %926 = vadd.xlane.f32.xlu1 %v2867_v54  ;;  %2661 = vmatprep.mubr.bf16.mxu1 %v950_v14  ;;  %v865_v30 = vpop.xlane.xlu0 %864 }
 0x3a4   :  { %v2871_v27 = vpop.eup %2870  ;;  %2880 = vpow2.f32 %v908_v19  ;;  %v910_v32 = vmul.f32 1.442695, %v881_v28  ;;  %928 = vadd.xlane.f32.xlu0 %v2869_v5  ;;  %v882_v11 = vsub.f32 %v3574_v33, %v865_v30  ;;  %2676 = vmatpush3.bf16.msra.mxu1 %v2851_v7 }
 0x3a5   :  { %v867_v42 = vpop.xlane.xlu1 %866  ;;  %v951_v43 = vpack.c.bf16 %v2871_v27, %v2869_v5  ;;  %2713 = vmatprep.subr.bf16.mxu1 %v2852_v13 }
 0x3a6   :  { %v2873_v62 = vpop.eup %2872  ;;  %2882 = vpow2.f32 %v910_v32  ;;  %v912_v8 = vmul.f32 1.442695, %v882_v11  ;;  %v883_v44 = vsub.f32 %v3578_v37, %v867_v42 }
 0x3a7   :  { %930 = vadd.xlane.f32.xlu1 %v2871_v27  ;;  %2662 = vmatmul.mubr.bf16.gmra.mrb[36].mxu1 %v951_v43  ;;  %v2853_v43 = vld [vmem:[%s4012_s8 + $0x18] sm:$0xff]  }
 0x3a8   :  { %v2875_v51 = vpop.eup %2874  ;;  %2884 = vpow2.f32 %v912_v8  ;;  %v914_v18 = vmul.f32 1.442695, %v883_v44  ;;  %932 = vadd.xlane.f32.xlu0 %v2873_v62 }
 0x3a9   :  { %v952_v4 = vpack.c.bf16 %v2875_v51, %v2873_v62 }
 0x3aa   :  { %v2877_v52 = vpop.eup %2876  ;;  %2886 = vpow2.f32 %v914_v18 }
 0x3ab   :  { %934 = vadd.xlane.f32.xlu1 %v2875_v51  ;;  %2665 = vmatprep.mubr.bf16.mxu1 %v952_v4 }
 0x3ac   :  { %v2879_v48 = vpop.eup %2878  ;;  %936 = vadd.xlane.f32.xlu0 %v2877_v52 }
 0x3ad   :  { %v953_v33 = vpack.c.bf16 %v2879_v48, %v2877_v52 }
 0x3ae   :  { %v2881_v31 = vpop.eup %2880 }
 0x3af   :  { %938 = vadd.xlane.f32.xlu1 %v2879_v48  ;;  %2666 = vmatmul.mubr.bf16.gmra.mrb[40].mxu1 %v953_v33 }
 0x3b0   :  { %v2883_v56 = vpop.eup %2882  ;;  %940 = vadd.xlane.f32.xlu0 %v2881_v31 }
 0x3b1   :  { %v954_v37 = vpack.c.bf16 %v2883_v56, %v2881_v31 }
 0x3b2   :  { %v2885_v59 = vpop.eup %2884 }
 0x3b3   :  { %942 = vadd.xlane.f32.xlu1 %v2883_v56  ;;  %2669 = vmatprep.mubr.bf16.mxu1 %v954_v37 }
 0x3b4   :  { %v2887_v36 = vpop.eup %2886  ;;  %944 = vadd.xlane.f32.xlu0 %v2885_v59 }
 0x3b5   :  { %v955_v61 = vpack.c.bf16 %v2887_v36, %v2885_v59 }
 0x3b7   :  { %946 = vadd.xlane.f32.xlu1 %v2887_v36  ;;  %2670 = vmatmul.mubr.bf16.gmra.mrb[44].mxu1 %v955_v61 }
 0x424   :  { %v917_v55 = vpop.xlane.xlu0 %916 }
 0x425   :  { %2888 = vrcp.f32 %v917_v55 }
 0x428   :  { %v919_v15 = vpop.xlane.xlu1 %918  ;;  %v921_v17 = vpop.xlane.xlu0 %920 }
 0x429   :  { %2890 = vrcp.f32 %v921_v17 }
 0x42c   :  { %v923_v60 = vpop.xlane.xlu1 %922  ;;  %v925_v21 = vpop.xlane.xlu0 %924 }
 0x42d   :  { %2892 = vrcp.f32 %v923_v60 }
 0x42e   :  { %2894 = vrcp.f32 %v919_v15 }
 0x42f   :  { %2896 = vrcp.f32 %v925_v21  ;;  %v2889_v12 = vpop.eup %2888 }
 0x430   :  { %v927_v24 = vpop.xlane.xlu1 %926 }
 0x431   :  { %v929_v0 = vpop.xlane.xlu0 %928 }
 0x432   :  { %2898 = vrcp.f32 %v929_v0 }
 0x433   :  { %v2891_v41 = vpop.eup %2890 }
 0x434   :  { %v931_v29 = vpop.xlane.xlu1 %930 }
 0x435   :  { %v933_v35 = vpop.xlane.xlu0 %932  ;;  %2900 = vrcp.f32 %v931_v29 }
 0x436   :  { %2902 = vrcp.f32 %v927_v24 }
 0x437   :  { %v2893_v58 = vpop.eup %2892  ;;  %2904 = vrcp.f32 %v933_v35 }
 0x438   :  { %v935_v39 = vpop.xlane.xlu1 %934  ;;  %v2895_v14 = vpop.eup %2894 }
 0x439   :  { %v937_v20 = vpop.xlane.xlu0 %936  ;;  %v2897_v8 = vpop.eup %2896 }
 0x43a   :  { %2906 = vrcp.f32 %v937_v20 }
 0x43c   :  { %v939_v2 = vpop.xlane.xlu1 %938  ;;  %v2899_v51 = vpop.eup %2898 }
 0x43d   :  { %v941_v42 = vpop.xlane.xlu0 %940  ;;  %2908 = vrcp.f32 %v939_v2 }
 0x43e   :  { %2910 = vrcp.f32 %v935_v39 }
 0x43f   :  { %v2901_v4 = vpop.eup %2900  ;;  %2912 = vrcp.f32 %v941_v42 }
 0x440   :  { %v943_v62 = vpop.xlane.xlu1 %942  ;;  %v2903_v48 = vpop.eup %2902 }
 0x441   :  { %v945_v37 = vpop.xlane.xlu0 %944  ;;  %v2905_v50 = vpop.eup %2904 }
 0x442   :  { %2914 = vrcp.f32 %v945_v37 }
 0x444   :  { %v947_v61 = vpop.xlane.xlu1 %946 }
 0x445   :  { %2916 = vrcp.f32 %v947_v61 }
 0x446   :  { %2918 = vrcp.f32 %v943_v62 }
 0x471   :  { %v2659_v10 = vpop.f32.mrb[32].mxu1 }
 0x472   :  { %v998_v54 = vpop.f32.mrb[33].mxu1  ;;  %v1079_v5 = vmul.f32 %v2891_v41, %v2659_v10 }
 0x473   :  { %v2660_v45 = vpop.f32.mrb[34].mxu1  ;;  %v1077_v30 = vmul.f32 %v2889_v12, %v998_v54 }
 0x474   :  { %v1080_v19 = vmul.f32 %v2893_v58, %v2660_v45  ;;  %v1001_v28 = vpop.f32.mrb[35].mxu1 }
 0x475   :  { %v1078_v27 = vmul.f32 %v2895_v14, %v1001_v28 }
 0x476   :  { %v3613_v32 = vpack.c.bf16 %v1080_v19, %v1079_v5 }
 0x477   :  { %v3615_v11 = vpack.c.bf16 %v1078_v27, %v1077_v30 }
 0x479   :  { %2677 = vmatprep.mubr.msk.bf16.mxu1 %vm313_vm1, %v3615_v11  ;;  %2697 = vmatprep.mubr.msk.bf16.mxu0 %vm313_vm1, %v3615_v11 }
 0x47a   :  { %v2663_v44 = vpop.f32.mrb[36].mxu1  ;;  %2678 = vmatmul.mubr.msk.bf16.vlgmr.msra.gmra.mrb[48].mxu1 %vm313_vm1, %v3613_v32  ;;  %2698 = vmatmul.mubr.msk.bf16.vlgmr.msra.gmra.mrb[48].mxu0 %vm313_vm1, %v3613_v32 }
 0x47b   :  { %v1014_v18 = vpop.f32.mrb[37].mxu1  ;;  %2714 = vmatpush3.bf16.msra.mxu1 %v2852_v13  ;;  %v1083_v33 = vmul.f32 %v2899_v51, %v2663_v44  ;;  %v2907_v13 = vpop.eup %2906 }
 0x47c   :  { %v2664_v52 = vpop.f32.mrb[38].mxu1  ;;  %2715 = vmatprep.subr.bf16.mxu1 %v2853_v43  ;;  %v1081_v59 = vmul.f32 %v2897_v8, %v1014_v18  ;;  %v2909_v15 = vpop.eup %2908 }
 0x47d   :  { %v1084_v31 = vmul.f32 %v2901_v4, %v2664_v52  ;;  %v1017_v56 = vpop.f32.mrb[39].mxu1  ;;  %v2911_v60 = vpop.eup %2910 }
 0x47e   :  { %v1082_v36 = vmul.f32 %v2903_v48, %v1017_v56  ;;  %v2913_v10 = vpop.eup %2912 }
 0x47f   :  { %v1096_v1 = vpack.c.bf16 %v1084_v31, %v1083_v33  ;;  %2716 = vmatpush3.bf16.msra.mxu1 %v2853_v43  ;;  %v2915_v20 = vpop.eup %2914  ;;  %v3653_v43 = vld [vmem:[%s4009_s5 + $0x1] ss:$0 sm:$0xff] }
 0x480   :  { %v1095_v3 = vpack.c.bf16 %v1082_v36, %v1081_v59  ;;  %v2917_v58 = vpop.eup %2916 }
 0x481   :  { %v2919_v45 = vpop.eup %2918 }
 0x482   :  { %v2667_v7 = vpop.f32.mrb[40].mxu1  ;;  %2681 = vmatprep.mubr.msk.bf16.mxu1 %vm313_vm1, %v1095_v3  ;;  %2701 = vmatprep.mubr.msk.bf16.mxu0 %vm313_vm1, %v1095_v3 }
 0x483   :  { %v1030_v55 = vpop.f32.mrb[41].mxu1  ;;  %2682 = vmatmul.mubr.msk.bf16.gmra.mrb[52].mxu1 %vm313_vm1, %v1096_v1  ;;  %2702 = vmatmul.mubr.msk.bf16.gmra.mrb[52].mxu0 %vm313_vm1, %v1096_v1  ;;  %v1087_v21 = vmul.f32 %v2907_v13, %v2667_v7 }
 0x484   :  { %v2668_v17 = vpop.f32.mrb[42].mxu1  ;;  %v1085_v29 = vmul.f32 %v2905_v50, %v1030_v55 }
 0x485   :  { %v1088_v24 = vmul.f32 %v2909_v15, %v2668_v17  ;;  %v1033_v0 = vpop.f32.mrb[43].mxu1 }
 0x486   :  { %v1086_v35 = vmul.f32 %v2911_v60, %v1033_v0 }
 0x487   :  { %v1098_v39 = vpack.c.bf16 %v1088_v24, %v1087_v21 }
 0x488   :  { %v1097_v12 = vpack.c.bf16 %v1086_v35, %v1085_v29 }
 0x48a   :  { %v2671_v41 = vpop.f32.mrb[44].mxu1  ;;  %2685 = vmatprep.mubr.msk.bf16.mxu1 %vm313_vm1, %v1097_v12  ;;  %2705 = vmatprep.mubr.msk.bf16.mxu0 %vm313_vm1, %v1097_v12 }
 0x48b   :  { %v1046_v54 = vpop.f32.mrb[45].mxu1  ;;  %2686 = vmatmul.mubr.msk.bf16.gmra.mrb[56].mxu1 %vm313_vm1, %v1098_v39  ;;  %2706 = vmatmul.mubr.msk.bf16.gmra.mrb[56].mxu0 %vm313_vm1, %v1098_v39  ;;  %v1091_v14 = vmul.f32 %v2915_v20, %v2671_v41 }
 0x48c   :  { %v2672_v2 = vpop.f32.mrb[46].mxu1  ;;  %v1089_v28 = vmul.f32 %v2913_v10, %v1046_v54 }
 0x48d   :  { %v1092_v5 = vmul.f32 %v2917_v58, %v2672_v2  ;;  %v1049_v19 = vpop.f32.mrb[47].mxu1 }
 0x48e   :  { %v1090_v30 = vmul.f32 %v2919_v45, %v1049_v19 }
 0x48f   :  { %v1100_v27 = vpack.c.bf16 %v1092_v5, %v1091_v14 }
 0x490   :  { %v1099_v42 = vpack.c.bf16 %v1090_v30, %v1089_v28 }
 0x492   :  { %2689 = vmatprep.mubr.msk.bf16.mxu1 %vm313_vm1, %v1099_v42  ;;  %2709 = vmatprep.mubr.msk.bf16.mxu0 %vm313_vm1, %v1099_v42 }
 0x493   :  { %2690 = vmatmul.mubr.msk.bf16.gmra.mrb[60].mxu1 %vm313_vm1, %v1100_v27  ;;  %2710 = vmatmul.mubr.msk.bf16.gmra.mrb[60].mxu0 %vm313_vm1, %v1100_v27 }
 0x494   :  { %2717 = vmatprep.mubr.msk.bf16.mxu1 %vm313_vm1, %v3615_v11 }
 0x49b   :  { %2718 = vmatmul.mubr.msk.bf16.vlgmr.msra.gmra.mrb[64].mxu1 %vm313_vm1, %v3613_v32  ;;  %v3655_v32 = vld [vmem:[#allocation5 + $0x1] ss:$0 sm:$0xff] }
 0x49c   :  { %2721 = vmatprep.mubr.msk.bf16.mxu1 %vm313_vm1, %v1095_v3 }
 0x4a3   :  { %2722 = vmatmul.mubr.msk.bf16.gmra.mrb[68].mxu1 %vm313_vm1, %v1096_v1 }
 0x4a4   :  { %2725 = vmatprep.mubr.msk.bf16.mxu1 %vm313_vm1, %v1097_v12 }
 0x4ab   :  { %2726 = vmatmul.mubr.msk.bf16.gmra.mrb[72].mxu1 %vm313_vm1, %v1098_v39 }
 0x4ac   :  { %2729 = vmatprep.mubr.msk.bf16.mxu1 %vm313_vm1, %v1099_v42 }
 0x4b3   :  { %2730 = vmatmul.mubr.msk.bf16.gmra.mrb[76].mxu1 %vm313_vm1, %v1100_v27 }
 0x54d   :  { %v2679_v11 = vpop.f32.mrb[48].mxu1  ;;  %v2699_v62 = vpop.f32.mrb[48].mxu0 }
 0x54e   :  { %v3658_v8 = vadd.f32 %v2679_v11, %v3653_v43  ;;  %v1184_v44 = vpop.f32.mrb[49].mxu1  ;;  %v1306_v51 = vpop.f32.mrb[49].mxu0  ;;  %v1315_v52 = vadd.f32 %v2699_v62, %v3655_v32 }
 0x54f   :  { %v2680_v18 = vpop.f32.mrb[50].mxu1  ;;  %v2700_v4 = vpop.f32.mrb[50].mxu0  ;;  %v1185_v37 = vadd.f32 %v3653_v43, %v1184_v44  ;;  %v1307_v59 = vadd.f32 %v3655_v32, %v1306_v51 }
 0x550   :  { %v3662_v48 = vadd.f32 %v2680_v18, %v3653_v43  ;;  %v1318_v33 = vadd.f32 %v2700_v4, %v3655_v32  ;;  %v1187_v31 = vpop.f32.mrb[51].mxu1  ;;  %v1309_v56 = vpop.f32.mrb[51].mxu0 }
 0x551   :  { %v1188_v36 = vadd.f32 %v3653_v43, %v1187_v31  ;;  %v1310_v61 = vadd.f32 %v3655_v32, %v1309_v56 }
 0x552   :  { %v1492_v1 = vpack.c.bf16 %v3662_v48, %v3658_v8  ;;  %v1500_v3 = vpack.c.bf16 %v1318_v33, %v1315_v52 }
 0x553   :  { %v1491_v50 = vpack.c.bf16 %v1188_v36, %v1185_v37  ;;  %v1499_v7 = vpack.c.bf16 %v1310_v61, %v1307_v59 }
 0x554   :  { %v1535_v19 = vsel %vm313_vm1, %v1500_v3, 0 }
 0x555   :  { %2825 = vmatprep.subr.msk.bf16.mxu0 %vm313_vm1, %v1499_v7  ;;  %2749 = vmatprep.mubr.msk.bf16.mxu0 %vm313_vm1, %v1491_v50  ;;  %v1532_v13 = vsel %vm313_vm1, %v1499_v7, 0 }
 0x556   :  { %v2683_v55 = vpop.f32.mrb[52].mxu1  ;;  %v2703_v15 = vpop.f32.mrb[52].mxu0  ;;  %2734 = vmatpush3.bf16.xpose.msra.mxu0 %v1532_v13 }
 0x557   :  { %v3675_v17 = vadd.f32 %v2683_v55, %v3653_v43  ;;  %v1200_v60 = vpop.f32.mrb[53].mxu1  ;;  %v1322_v21 = vpop.f32.mrb[53].mxu0  ;;  %2826 = vmatprep.subr.msk.bf16.mxu0 %vm313_vm1, %v1500_v3  ;;  %v1331_v35 = vadd.f32 %v2703_v15, %v3655_v32 }
 0x558   :  { %v3679_v24 = vadd.f32 %v3653_v43, %v1200_v60  ;;  %v2684_v0 = vpop.f32.mrb[54].mxu1  ;;  %v2704_v29 = vpop.f32.mrb[54].mxu0  ;;  %v1323_v20 = vadd.f32 %v3655_v32, %v1322_v21 }
 0x559   :  { %v3683_v39 = vadd.f32 %v2684_v0, %v3653_v43  ;;  %v1334_v12 = vadd.f32 %v2704_v29, %v3655_v32  ;;  %v1203_v10 = vpop.f32.mrb[55].mxu1  ;;  %v1325_v41 = vpop.f32.mrb[55].mxu0 }
 0x55a   :  { %v3688_v54 = vadd.f32 %v3653_v43, %v1203_v10  ;;  %v1326_v58 = vadd.f32 %v3655_v32, %v1325_v41 }
 0x55b   :  { %v1494_v2 = vpack.c.bf16 %v3683_v39, %v3675_v17  ;;  %v1502_v45 = vpack.c.bf16 %v1334_v12, %v1331_v35 }
 0x55c   :  { %v1493_v14 = vpack.c.bf16 %v3688_v54, %v3679_v24  ;;  %v1501_v5 = vpack.c.bf16 %v1326_v58, %v1323_v20 }
 0x55e   :  { %v2687_v28 = vpop.f32.mrb[56].mxu1  ;;  %v2707_v30 = vpop.f32.mrb[56].mxu0  ;;  %2736 = vmatpush3.bf16.xpose.msra.mxu0 %v1535_v19  ;;  %v1538_v7 = vsel %vm313_vm1, %v1501_v5, 0 }
 0x55f   :  { %v3697_v27 = vadd.f32 %v2687_v28, %v3653_v43  ;;  %v1216_v42 = vpop.f32.mrb[57].mxu1  ;;  %v1338_v11 = vpop.f32.mrb[57].mxu0  ;;  %2827 = vmatprep.subr.msk.bf16.mxu0 %vm313_vm1, %v1501_v5  ;;  %v1347_v18 = vadd.f32 %v2707_v30, %v3655_v32 }
 0x560   :  { %v3701_v62 = vadd.f32 %v3653_v43, %v1216_v42  ;;  %v2688_v44 = vpop.f32.mrb[58].mxu1  ;;  %v2708_v51 = vpop.f32.mrb[58].mxu0  ;;  %v1339_v56 = vadd.f32 %v3655_v32, %v1338_v11 }
 0x561   :  { %v3705_v4 = vadd.f32 %v2688_v44, %v3653_v43  ;;  %v1350_v52 = vadd.f32 %v2708_v51, %v3655_v32  ;;  %v1219_v33 = vpop.f32.mrb[59].mxu1  ;;  %v1341_v31 = vpop.f32.mrb[59].mxu0  ;;  %v1541_v51 = vsel %vm313_vm1, %v1502_v45, 0 }
 0x562   :  { %v3710_v37 = vadd.f32 %v3653_v43, %v1219_v33  ;;  %v1342_v59 = vadd.f32 %v3655_v32, %v1341_v31 }
 0x563   :  { %v1496_v36 = vpack.c.bf16 %v3705_v4, %v3697_v27  ;;  %v1504_v61 = vpack.c.bf16 %v1350_v52, %v1347_v18  ;;  %v2358_v52 = vld [vmem:[%s4013_s9 + $0x1] ss:$0 sm:$0xff] }
 0x564   :  { %v1495_v3 = vpack.c.bf16 %v3710_v37, %v3701_v62  ;;  %v1503_v50 = vpack.c.bf16 %v1342_v59, %v1339_v56 }
 0x566   :  { %v2691_v13 = vpop.f32.mrb[60].mxu1  ;;  %v2711_v55 = vpop.f32.mrb[60].mxu0  ;;  %2738 = vmatpush3.bf16.xpose.msra.mxu0 %v1538_v7 }
 0x567   :  { %v3719_v15 = vadd.f32 %v2691_v13, %v3653_v43  ;;  %v1232_v60 = vpop.f32.mrb[61].mxu1  ;;  %v1354_v21 = vpop.f32.mrb[61].mxu0  ;;  %2828 = vmatprep.subr.msk.bf16.mxu0 %vm313_vm1, %v1502_v45  ;;  %v1363_v12 = vadd.f32 %v2711_v55, %v3655_v32 }
 0x568   :  { %v3723_v0 = vadd.f32 %v3653_v43, %v1232_v60  ;;  %v2692_v29 = vpop.f32.mrb[62].mxu1  ;;  %v2712_v35 = vpop.f32.mrb[62].mxu0  ;;  %v1355_v5 = vadd.f32 %v3655_v32, %v1354_v21  ;;  %v1544_v60 = vsel %vm313_vm1, %v1503_v50, 0 }
 0x569   :  { %v3727_v10 = vadd.f32 %v2692_v29, %v3653_v43  ;;  %v1366_v41 = vadd.f32 %v2712_v35, %v3655_v32  ;;  %v1235_v20 = vpop.f32.mrb[63].mxu1  ;;  %v1357_v58 = vpop.f32.mrb[63].mxu0 }
 0x56a   :  { %v3732_v19 = vadd.f32 %v3653_v43, %v1235_v20  ;;  %v1358_v28 = vadd.f32 %v3655_v32, %v1357_v58 }
 0x56b   :  { %v1498_v30 = vpack.c.bf16 %v3727_v10, %v3719_v15  ;;  %v3737_v42 = vpack.c.bf16 %v1366_v41, %v1363_v12 }
 0x56c   :  { %v1497_v11 = vpack.c.bf16 %v3732_v19, %v3723_v0  ;;  %v1505_v44 = vpack.c.bf16 %v1358_v28, %v1355_v5 }
 0x56e   :  { %v2719_v18 = vpop.f32.mrb[64].mxu1  ;;  %2740 = vmatpush3.bf16.xpose.msra.mxu0 %v1541_v51  ;;  %v1547_v51 = vsel %vm313_vm1, %v1504_v61, 0 }
 0x56f   :  { %v1428_v43 = vpop.f32.mrb[65].mxu1  ;;  %2829 = vmatprep.subr.msk.bf16.mxu0 %vm313_vm1, %v1503_v50  ;;  %v1437_v33 = vadd.f32 %v2719_v18, %v2358_v52 }
 0x570   :  { %v2720_v32 = vpop.f32.mrb[66].mxu1  ;;  %v1429_v59 = vadd.f32 %v2358_v52, %v1428_v43 }
 0x571   :  { %v1440_v31 = vadd.f32 %v2720_v32, %v2358_v52  ;;  %v1431_v56 = vpop.f32.mrb[67].mxu1 }
 0x572   :  { %v1432_v7 = vadd.f32 %v2358_v52, %v1431_v56 }
 0x573   :  { %v1773_v13 = vpack.c.bf16 %v1440_v31, %v1437_v33 }
 0x574   :  { %v1772_v55 = vpack.c.bf16 %v1432_v7, %v1429_v59 }
 0x576   :  { %v2723_v45 = vpop.f32.mrb[68].mxu1  ;;  %2742 = vmatpush3.bf16.xpose.msra.mxu0 %v1544_v60  ;;  %2765 = vmatprep.subr.bf16.mxu1 %v1772_v55 }
 0x577   :  { %v1444_v21 = vpop.f32.mrb[69].mxu1  ;;  %2830 = vmatprep.subr.msk.bf16.mxu0 %vm313_vm1, %v1504_v61  ;;  %2766 = vmatpush3.bf16.msra.mxu1 %v1772_v55  ;;  %v1453_v35 = vadd.f32 %v2723_v45, %v2358_v52  ;;  %v1550_v55 = vsel %vm313_vm1, %v1505_v44, 0 }
 0x578   :  { %v2724_v29 = vpop.f32.mrb[70].mxu1  ;;  %2767 = vmatprep.subr.bf16.mxu1 %v1773_v13  ;;  %v1445_v20 = vadd.f32 %v2358_v52, %v1444_v21 }
 0x579   :  { %v1456_v12 = vadd.f32 %v2724_v29, %v2358_v52  ;;  %v1447_v41 = vpop.f32.mrb[71].mxu1 }
 0x57a   :  { %v1448_v58 = vadd.f32 %v2358_v52, %v1447_v41 }
 0x57b   :  { %v1775_v5 = vpack.c.bf16 %v1456_v12, %v1453_v35  ;;  %2768 = vmatpush3.bf16.msra.mxu1 %v1773_v13 }
 0x57c   :  { %v1774_v28 = vpack.c.bf16 %v1448_v58, %v1445_v20 }
 0x57e   :  { %v2727_v50 = vpop.f32.mrb[72].mxu1  ;;  %2744 = vmatpush3.bf16.xpose.msra.mxu0 %v1547_v51  ;;  %2769 = vmatprep.subr.bf16.mxu1 %v1774_v28 }
 0x57f   :  { %v1460_v18 = vpop.f32.mrb[73].mxu1  ;;  %2831 = vmatprep.subr.msk.bf16.mxu0 %vm313_vm1, %v1505_v44  ;;  %2770 = vmatpush3.bf16.msra.mxu1 %v1774_v28  ;;  %v1469_v32 = vadd.f32 %v2727_v50, %v2358_v52  ;;  %v1553_v44 = vsel %vm313_vm1, %v3737_v42, 0 }
 0x580   :  { %v2728_v43 = vpop.f32.mrb[74].mxu1  ;;  %2771 = vmatprep.subr.bf16.mxu1 %v1775_v5  ;;  %v1461_v56 = vadd.f32 %v2358_v52, %v1460_v18 }
 0x581   :  { %v1472_v33 = vadd.f32 %v2728_v43, %v2358_v52  ;;  %v1463_v31 = vpop.f32.mrb[75].mxu1 }
 0x582   :  { %v1464_v59 = vadd.f32 %v2358_v52, %v1463_v31 }
 0x583   :  { %v1777_v7 = vpack.c.bf16 %v1472_v33, %v1469_v32  ;;  %2772 = vmatpush3.bf16.msra.mxu1 %v1775_v5 }
 0x584   :  { %v1776_v13 = vpack.c.bf16 %v1464_v59, %v1461_v56 }
 0x586   :  { %v2731_v61 = vpop.f32.mrb[76].mxu1  ;;  %2746 = vmatpush3.bf16.xpose.msra.mxu0 %v1550_v55  ;;  %2773 = vmatprep.subr.bf16.mxu1 %v1776_v13 }
 0x587   :  { %v1476_v60 = vpop.f32.mrb[77].mxu1  ;;  %2832 = vmatprep.subr.msk.bf16.mxu0 %vm313_vm1, %v3737_v42  ;;  %2774 = vmatpush3.bf16.msra.mxu1 %v1776_v13  ;;  %v1485_v21 = vadd.f32 %v2731_v61, %v2358_v52 }
 0x588   :  { %v2732_v45 = vpop.f32.mrb[78].mxu1  ;;  %2775 = vmatprep.subr.bf16.mxu1 %v1777_v7  ;;  %v1477_v12 = vadd.f32 %v2358_v52, %v1476_v60 }
 0x589   :  { %v1488_v29 = vadd.f32 %v2732_v45, %v2358_v52  ;;  %v1479_v35 = vpop.f32.mrb[79].mxu1 }
 0x58a   :  { %v1480_v41 = vadd.f32 %v2358_v52, %v1479_v35 }
 0x58b   :  { %v1779_v20 = vpack.c.bf16 %v1488_v29, %v1485_v21  ;;  %2776 = vmatpush3.bf16.msra.mxu1 %v1777_v7 }
 0x58c   :  { %v1778_v58 = vpack.c.bf16 %v1480_v41, %v1477_v12 }
 0x58e   :  { %2748 = vmatpush3.bf16.xpose.msra.mxu0 %v1553_v44  ;;  %2777 = vmatprep.subr.bf16.mxu1 %v1778_v58 }
 0x58f   :  { %2778 = vmatpush3.bf16.msra.mxu1 %v1778_v58 }
 0x590   :  { %2779 = vmatprep.subr.bf16.mxu1 %v1779_v20 }
 0x593   :  { %2780 = vmatpush3.bf16.msra.mxu1 %v1779_v20 }
 0x595   :  { %2750 = vmatmul.mubr.msk.bf16.vlgmr.msra.gmra.mrb[64].mxu0 %vm313_vm1, %v1492_v1 }
 0x596   :  { %2753 = vmatprep.mubr.msk.bf16.mxu0 %vm313_vm1, %v1493_v14 }
 0x59d   :  { %2754 = vmatmul.mubr.msk.bf16.gmra.mrb[68].mxu0 %vm313_vm1, %v1494_v2 }
 0x59e   :  { %2757 = vmatprep.mubr.msk.bf16.mxu0 %vm313_vm1, %v1495_v3 }
 0x5a5   :  { %2758 = vmatmul.mubr.msk.bf16.gmra.mrb[72].mxu0 %vm313_vm1, %v1496_v36 }
 0x5a6   :  { %2761 = vmatprep.mubr.msk.bf16.mxu0 %vm313_vm1, %v1497_v11 }
 0x5ad   :  { %2762 = vmatmul.mubr.msk.bf16.gmra.mrb[76].mxu0 %vm313_vm1, %v1498_v30 }
 0x668   :  { %v2751_v8 = vpop.f32.mrb[64].mxu0 }
 0x669   :  { %v1589_v48 = vpop.f32.mrb[65].mxu0  ;;  %v1598_v54 = vadd.f32 %v2751_v8, %v3465_v47 }
 0x66a   :  { %v1590_v1 = vadd.f32 %v1589_v48, %v3468_v49  ;;  %v2752_v17 = vpop.f32.mrb[66].mxu0 }
 0x66b   :  { %v1592_v24 = vpop.f32.mrb[67].mxu0  ;;  %v1601_v2 = vadd.f32 %v2752_v17, %v3477_v6 }
 0x66c   :  { %v1593_v39 = vadd.f32 %v1592_v24, %v3480_v23  ;;  %1652 = vmax.xlane.f32.xlu0 %v1590_v1 }
 0x66e   :  { %1654 = vmax.xlane.f32.xlu1 %v1593_v39 }
 0x670   :  { %v2755_v14 = vpop.f32.mrb[68].mxu0  ;;  %1656 = vmax.xlane.f32.xlu0 %v1598_v54 }
 0x671   :  { %v1605_v27 = vpop.f32.mrb[69].mxu0  ;;  %v1614_v36 = vadd.f32 %v2755_v14, %v3505_v53 }
 0x672   :  { %v1606_v62 = vadd.f32 %v1605_v27, %v3495_v40  ;;  %v2756_v4 = vpop.f32.mrb[70].mxu0  ;;  %1658 = vmax.xlane.f32.xlu1 %v1601_v2 }
 0x673   :  { %v1608_v37 = vpop.f32.mrb[71].mxu0  ;;  %v1617_v23 = vadd.f32 %v2756_v4, %v3512_v57 }
 0x674   :  { %v1609_v49 = vadd.f32 %v1608_v37, %v3499_v46  ;;  %1660 = vmax.xlane.f32.xlu0 %v1606_v62 }
 0x676   :  { %1662 = vmax.xlane.f32.xlu1 %v1609_v49 }
 0x678   :  { %v2759_v47 = vpop.f32.mrb[72].mxu0  ;;  %1664 = vmax.xlane.f32.xlu0 %v1614_v36 }
 0x679   :  { %v1621_v3 = vpop.f32.mrb[73].mxu0  ;;  %v3799_v46 = vadd.f32 %v2759_v47, %v3536_v16 }
 0x67a   :  { %v3792_v6 = vadd.f32 %v1621_v3, %v3522_v63  ;;  %v2760_v15 = vpop.f32.mrb[74].mxu0  ;;  %1666 = vmax.xlane.f32.xlu1 %v1617_v23 }
 0x67b   :  { %v1624_v40 = vpop.f32.mrb[75].mxu0  ;;  %v3803_v53 = vadd.f32 %v2760_v15, %v3543_v22 }
 0x67c   :  { %v3795_v0 = vadd.f32 %v1624_v40, %v3529_v9  ;;  %1668 = vmax.xlane.f32.xlu0 %v3792_v6 }
 0x67e   :  { %1670 = vmax.xlane.f32.xlu1 %v3795_v0 }
 0x680   :  { %1672 = vmax.xlane.f32.xlu0 %v3799_v46  ;;  %v2763_v57 = vpop.f32.mrb[76].mxu0 }
 0x681   :  { %v1637_v63 = vpop.f32.mrb[77].mxu0  ;;  %v3815_v16 = vadd.f32 %v2763_v57, %v3564_v34 }
 0x682   :  { %v3807_v10 = vadd.f32 %v1637_v63, %v3550_v25  ;;  %1674 = vmax.xlane.f32.xlu1 %v3803_v53  ;;  %v2764_v9 = vpop.f32.mrb[78].mxu0 }
 0x683   :  { %v1640_v19 = vpop.f32.mrb[79].mxu0  ;;  %v3819_v22 = vadd.f32 %v2764_v9, %v3571_v26 }
 0x684   :  { %v3811_v30 = vadd.f32 %v1640_v19, %v3557_v38  ;;  %1676 = vmax.xlane.f32.xlu0 %v3807_v10 }
 0x686   :  { %1678 = vmax.xlane.f32.xlu1 %v3811_v30 }
 0x688   :  { %1680 = vmax.xlane.f32.xlu0 %v3815_v16 }
 0x68a   :  { %1682 = vmax.xlane.f32.xlu1 %v3819_v22 }
 0x6f9   :  { %v1653_v25 = vpop.xlane.xlu0 %1652 }
 0x6fa   :  { %v1684_v42 = vsub.f32 %v1590_v1, %v1653_v25 }
 0x6fb   :  { %v1655_v11 = vpop.xlane.xlu1 %1654 }
 0x6fc   :  { %v1700_v52 = vmul.f32 1.442695, %v1684_v42  ;;  %v1685_v38 = vsub.f32 %v1593_v39, %v1655_v11 }
 0x6fd   :  { %v1657_v5 = vpop.xlane.xlu0 %1656 }
 0x6fe   :  { %2920 = vpow2.f32 %v1700_v52  ;;  %v1702_v28 = vmul.f32 1.442695, %v1685_v38  ;;  %v1686_v51 = vsub.f32 %v1598_v54, %v1657_v5 }
 0x6ff   :  { %v1659_v34 = vpop.xlane.xlu1 %1658 }
 0x700   :  { %2922 = vpow2.f32 %v1702_v28  ;;  %v1704_v50 = vmul.f32 1.442695, %v1686_v51  ;;  %v1687_v18 = vsub.f32 %v1601_v2, %v1659_v34  ;;  %v2854_v34 = vld [vmem:[%s4014_s10] sm:$0xff]  }
 0x701   :  { %v1661_v43 = vpop.xlane.xlu0 %1660  ;;  %2797 = vmatprep.subr.bf16.mxu1 %v2854_v34 }
 0x702   :  { %2924 = vpow2.f32 %v1704_v50  ;;  %v1706_v26 = vmul.f32 1.442695, %v1687_v18  ;;  %v1688_v32 = vsub.f32 %v1606_v62, %v1661_v43  ;;  %v2855_v50 = vld [vmem:[%s4014_s10 + $0x8] sm:$0xff]  }
 0x703   :  { %v1663_v33 = vpop.xlane.xlu1 %1662 }
 0x704   :  { %2926 = vpow2.f32 %v1706_v26  ;;  %v1708_v31 = vmul.f32 1.442695, %v1688_v32  ;;  %v1689_v56 = vsub.f32 %v1609_v49, %v1663_v33 }
 0x705   :  { %v1665_v59 = vpop.xlane.xlu0 %1664 }
 0x706   :  { %2928 = vpow2.f32 %v1708_v31  ;;  %v1710_v7 = vmul.f32 1.442695, %v1689_v56  ;;  %v1690_v13 = vsub.f32 %v1614_v36, %v1665_v59 }
 0x707   :  { %v1667_v55 = vpop.xlane.xlu1 %1666 }
 0x708   :  { %v2921_v61 = vpop.eup %2920  ;;  %2930 = vpow2.f32 %v1710_v7  ;;  %v1712_v60 = vmul.f32 1.442695, %v1690_v13  ;;  %v1691_v45 = vsub.f32 %v1617_v23, %v1667_v55 }
 0x709   :  { %v1669_v21 = vpop.xlane.xlu0 %1668  ;;  %1732 = vadd.xlane.f32.xlu0 %v2921_v61 }
 0x70a   :  { %v2923_v29 = vpop.eup %2922  ;;  %2932 = vpow2.f32 %v1712_v60  ;;  %v1714_v35 = vmul.f32 1.442695, %v1691_v45  ;;  %v1692_v12 = vsub.f32 %v3792_v6, %v1669_v21 }
 0x70b   :  { %v1671_v41 = vpop.xlane.xlu1 %1670  ;;  %1734 = vadd.xlane.f32.xlu1 %v2923_v29  ;;  %v1764_v20 = vpack.c.bf16 %v2923_v29, %v2921_v61 }
 0x70c   :  { %v2925_v58 = vpop.eup %2924  ;;  %2934 = vpow2.f32 %v1714_v35  ;;  %v1716_v44 = vmul.f32 1.442695, %v1692_v12  ;;  %v1693_v8 = vsub.f32 %v3795_v0, %v1671_v41 }
 0x70d   :  { %v1673_v48 = vpop.xlane.xlu0 %1672  ;;  %2781 = vmatprep.mubr.bf16.mxu1 %v1764_v20  ;;  %1736 = vadd.xlane.f32.xlu0 %v2925_v58 }
 0x70e   :  { %v2927_v1 = vpop.eup %2926  ;;  %2936 = vpow2.f32 %v1716_v44  ;;  %v1718_v17 = vmul.f32 1.442695, %v1693_v8  ;;  %v1694_v24 = vsub.f32 %v3799_v46, %v1673_v48 }
 0x70f   :  { %v1675_v39 = vpop.xlane.xlu1 %1674  ;;  %1738 = vadd.xlane.f32.xlu1 %v2927_v1  ;;  %v1765_v54 = vpack.c.bf16 %v2927_v1, %v2925_v58 }
 0x710   :  { %v2929_v2 = vpop.eup %2928  ;;  %2938 = vpow2.f32 %v1718_v17  ;;  %v1720_v14 = vmul.f32 1.442695, %v1694_v24  ;;  %v1695_v27 = vsub.f32 %v3803_v53, %v1675_v39 }
 0x711   :  { %2782 = vmatmul.mubr.bf16.vlgmr.msra.gmra.mrb[80].mxu1 %v1765_v54  ;;  %1740 = vadd.xlane.f32.xlu0 %v2929_v2  ;;  %v1677_v62 = vpop.xlane.xlu0 %1676 }
 0x712   :  { %v2931_v4 = vpop.eup %2930  ;;  %2940 = vpow2.f32 %v1720_v14  ;;  %v1722_v37 = vmul.f32 1.442695, %v1695_v27  ;;  %v1696_v49 = vsub.f32 %v3807_v10, %v1677_v62  ;;  %2798 = vmatpush3.bf16.msra.mxu1 %v2854_v34 }
 0x713   :  { %1742 = vadd.xlane.f32.xlu1 %v2931_v4  ;;  %v1679_v36 = vpop.xlane.xlu1 %1678  ;;  %v1766_v23 = vpack.c.bf16 %v2931_v4, %v2929_v2  ;;  %2799 = vmatprep.subr.bf16.mxu1 %v2855_v50 }
 0x714   :  { %v2933_v47 = vpop.eup %2932  ;;  %2942 = vpow2.f32 %v1722_v37  ;;  %v1724_v3 = vmul.f32 1.442695, %v1696_v49  ;;  %v1697_v6 = vsub.f32 %v3811_v30, %v1679_v36 }
 0x715   :  { %2785 = vmatprep.mubr.bf16.mxu1 %v1766_v23  ;;  %1744 = vadd.xlane.f32.xlu0 %v2933_v47  ;;  %v1681_v15 = vpop.xlane.xlu0 %1680 }
 0x716   :  { %v2935_v40 = vpop.eup %2934  ;;  %2944 = vpow2.f32 %v1724_v3  ;;  %v1726_v0 = vmul.f32 1.442695, %v1697_v6  ;;  %v1698_v46 = vsub.f32 %v3815_v16, %v1681_v15  ;;  %2800 = vmatpush3.bf16.msra.mxu1 %v2855_v50 }
 0x717   :  { %1746 = vadd.xlane.f32.xlu1 %v2935_v40  ;;  %v1683_v53 = vpop.xlane.xlu1 %1682  ;;  %v1767_v57 = vpack.c.bf16 %v2935_v40, %v2933_v47 }
 0x718   :  { %v2937_v63 = vpop.eup %2936  ;;  %2946 = vpow2.f32 %v1726_v0  ;;  %v1728_v10 = vmul.f32 1.442695, %v1698_v46  ;;  %v1699_v9 = vsub.f32 %v3819_v22, %v1683_v53 }
 0x719   :  { %2786 = vmatmul.mubr.bf16.gmra.mrb[84].mxu1 %v1767_v57  ;;  %1748 = vadd.xlane.f32.xlu0 %v2937_v63 }
 0x71a   :  { %v2939_v19 = vpop.eup %2938  ;;  %2948 = vpow2.f32 %v1728_v10  ;;  %v1730_v30 = vmul.f32 1.442695, %v1699_v9 }
 0x71b   :  { %1750 = vadd.xlane.f32.xlu1 %v2939_v19  ;;  %v1768_v25 = vpack.c.bf16 %v2939_v19, %v2937_v63 }
 0x71c   :  { %v2941_v42 = vpop.eup %2940  ;;  %2950 = vpow2.f32 %v1730_v30 }
 0x71d   :  { %2789 = vmatprep.mubr.bf16.mxu1 %v1768_v25  ;;  %1752 = vadd.xlane.f32.xlu0 %v2941_v42 }
 0x71e   :  { %v2943_v16 = vpop.eup %2942 }
 0x71f   :  { %1754 = vadd.xlane.f32.xlu1 %v2943_v16  ;;  %v1769_v11 = vpack.c.bf16 %v2943_v16, %v2941_v42 }
 0x720   :  { %v2945_v52 = vpop.eup %2944 }
 0x721   :  { %2790 = vmatmul.mubr.bf16.gmra.mrb[88].mxu1 %v1769_v11  ;;  %1756 = vadd.xlane.f32.xlu0 %v2945_v52 }
 0x722   :  { %v2947_v38 = vpop.eup %2946 }
 0x723   :  { %1758 = vadd.xlane.f32.xlu1 %v2947_v38  ;;  %v1770_v22 = vpack.c.bf16 %v2947_v38, %v2945_v52 }
 0x724   :  { %v2949_v5 = vpop.eup %2948 }
 0x725   :  { %2793 = vmatprep.mubr.bf16.mxu1 %v1770_v22  ;;  %1760 = vadd.xlane.f32.xlu0 %v2949_v5 }
 0x726   :  { %v2951_v28 = vpop.eup %2950 }
 0x727   :  { %1762 = vadd.xlane.f32.xlu1 %v2951_v28  ;;  %v1771_v51 = vpack.c.bf16 %v2951_v28, %v2949_v5 }
 0x729   :  { %2794 = vmatmul.mubr.bf16.gmra.mrb[92].mxu1 %v1771_v51 }
 0x796   :  { %v1733_v18 = vpop.xlane.xlu0 %1732 }
 0x797   :  { %2952 = vrcp.f32 %v1733_v18 }
 0x798   :  { %v1735_v43 = vpop.xlane.xlu1 %1734 }
 0x79a   :  { %v1737_v26 = vpop.xlane.xlu0 %1736 }
 0x79b   :  { %2954 = vrcp.f32 %v1737_v26 }
 0x79c   :  { %v1739_v32 = vpop.xlane.xlu1 %1738 }
 0x79d   :  { %2956 = vrcp.f32 %v1739_v32 }
 0x79e   :  { %v1741_v33 = vpop.xlane.xlu0 %1740  ;;  %2958 = vrcp.f32 %v1735_v43 }
 0x79f   :  { %2960 = vrcp.f32 %v1741_v33 }
 0x7a0   :  { %v1743_v31 = vpop.xlane.xlu1 %1742 }
 0x7a1   :  { %v2953_v55 = vpop.eup %2952 }
 0x7a2   :  { %v1745_v56 = vpop.xlane.xlu0 %1744 }
 0x7a3   :  { %2962 = vrcp.f32 %v1745_v56 }
 0x7a4   :  { %v1747_v59 = vpop.xlane.xlu1 %1746 }
 0x7a5   :  { %2964 = vrcp.f32 %v1747_v59  ;;  %v2955_v45 = vpop.eup %2954 }
 0x7a6   :  { %v1749_v7 = vpop.xlane.xlu0 %1748  ;;  %2966 = vrcp.f32 %v1743_v31 }
 0x7a7   :  { %v2957_v35 = vpop.eup %2956  ;;  %2968 = vrcp.f32 %v1749_v7  ;;  %v2377_v7 = vld [vmem:[%s4015_s11] ss:$0 sm:$0xff]  ;;  %s3125_s11 = smov [#allocation7]  }
 0x7a8   :  { %v1751_v13 = vpop.xlane.xlu1 %1750  ;;  %v2959_v41 = vpop.eup %2958  ;;  %s2258_s7 = sshll.u32 %s3125_s11, 4  ;;  %s2259_s7 = int_to_ptr.vmem [resolvable:$true] %s2258_s7 }
 0x7a9   :  { %v2961_v54 = vpop.eup %2960  ;;  %s3092_s24 = scalar_lea.vmem %s2259_s7, 2048  ;;  %p3097_p3 = scmp.lt.s32.totalorder %s2259_s7, %s2259_s7 }
 0x7aa   :  { %v1753_v61 = vpop.xlane.xlu0 %1752  ;;  %p3093_p2 = scmp.ne.s32.totalorder %s2259_s7, %s3092_s24  ;;  %p3098_p4 = scmp.lt.s32.totalorder %s3092_s24, %s3092_s24 }
 0x7ab   :  { %2970 = vrcp.f32 %v1753_v61 }
 0x7ac   :  { %v1755_v21 = vpop.xlane.xlu1 %1754  ;;  %p3099_p5 = por %p3098_p4, %p3097_p3 }
 0x7ad   :  { %2972 = vrcp.f32 %v1755_v21  ;;  %v2963_v14 = vpop.eup %2962 }
 0x7ae   :  { %v1757_v17 = vpop.xlane.xlu0 %1756  ;;  %2974 = vrcp.f32 %v1751_v13  ;;  %p3100_p6 = pnand %p3099_p5, %p3093_p2 }
 0x7af   :  { %v2965_v62 = vpop.eup %2964  ;;  %2976 = vrcp.f32 %v1757_v17 }
 0x7b0   :  { %v1759_v39 = vpop.xlane.xlu1 %1758  ;;  %v2967_v37 = vpop.eup %2966 }
 0x7b1   :  { %v2969_v46 = vpop.eup %2968 }
 0x7b2   :  { %v1761_v47 = vpop.xlane.xlu0 %1760 }
 0x7b3   :  { %2978 = vrcp.f32 %v1761_v47 }
 0x7b4   :  { %v1763_v15 = vpop.xlane.xlu1 %1762 }
 0x7b5   :  { %2980 = vrcp.f32 %v1763_v15  ;;  %v2971_v57 = vpop.eup %2970 }
 0x7b6   :  { %2982 = vrcp.f32 %v1759_v39 }
 0x7b7   :  { %v2973_v10 = vpop.eup %2972 }
 0x7b8   :  { %v2975_v19 = vpop.eup %2974 }
 0x7b9   :  { %v2977_v22 = vpop.eup %2976 }
 0x7bd   :  { %v2979_v28 = vpop.eup %2978 }
 0x7bf   :  { %v2981_v34 = vpop.eup %2980 }
 0x7c0   :  { %v2983_v18 = vpop.eup %2982 }
 0x7e4   :  { %v2783_v60 = vpop.f32.mrb[80].mxu1 }
 0x7e5   :  { %v1814_v29 = vpop.f32.mrb[81].mxu1  ;;  %v1895_v20 = vmul.f32 %v2955_v45, %v2783_v60 }
 0x7e6   :  { %v2784_v12 = vpop.f32.mrb[82].mxu1  ;;  %v1893_v8 = vmul.f32 %v2953_v55, %v1814_v29 }
 0x7e7   :  { %v1896_v58 = vmul.f32 %v2957_v35, %v2784_v12  ;;  %v1817_v44 = vpop.f32.mrb[83].mxu1 }
 0x7e8   :  { %v1894_v48 = vmul.f32 %v2959_v41, %v1817_v44 }
 0x7e9   :  { %v1910_v1 = vpack.c.bf16 %v1896_v58, %v1895_v20 }
 0x7ea   :  { %v1909_v24 = vpack.c.bf16 %v1894_v48, %v1893_v8 }
 0x7ec   :  { %v2787_v2 = vpop.f32.mrb[84].mxu1  ;;  %2801 = vmatprep.mubr.msk.bf16.mxu1 %vm313_vm1, %v1909_v24 }
 0x7ed   :  { %v1830_v27 = vpop.f32.mrb[85].mxu1  ;;  %2802 = vmatmul.mubr.msk.bf16.vlgmr.msra.gmra.mrb[96].mxu1 %vm313_vm1, %v1910_v1  ;;  %v1899_v49 = vmul.f32 %v2963_v14, %v2787_v2 }
 0x7ee   :  { %v2788_v4 = vpop.f32.mrb[86].mxu1  ;;  %v1897_v3 = vmul.f32 %v2961_v54, %v1830_v27 }
 0x7ef   :  { %v1900_v36 = vmul.f32 %v2965_v62, %v2788_v4  ;;  %v1833_v23 = vpop.f32.mrb[87].mxu1 }
 0x7f0   :  { %v1898_v6 = vmul.f32 %v2967_v37, %v1833_v23 }
 0x7f1   :  { %v1912_v40 = vpack.c.bf16 %v1900_v36, %v1899_v49 }
 0x7f2   :  { %v1911_v0 = vpack.c.bf16 %v1898_v6, %v1897_v3 }
 0x7f4   :  { %v2791_v53 = vpop.f32.mrb[88].mxu1  ;;  %2805 = vmatprep.mubr.msk.bf16.mxu1 %vm313_vm1, %v1911_v0 }
 0x7f5   :  { %v1846_v63 = vpop.f32.mrb[89].mxu1  ;;  %2806 = vmatmul.mubr.msk.bf16.gmra.mrb[100].mxu1 %vm313_vm1, %v1912_v40  ;;  %v1903_v30 = vmul.f32 %v2971_v57, %v2791_v53 }
 0x7f6   :  { %v2792_v9 = vpop.f32.mrb[90].mxu1  ;;  %v1901_v16 = vmul.f32 %v2969_v46, %v1846_v63 }
 0x7f7   :  { %v1904_v25 = vmul.f32 %v2973_v10, %v2792_v9  ;;  %v1849_v42 = vpop.f32.mrb[91].mxu1 }
 0x7f8   :  { %v1902_v11 = vmul.f32 %v2975_v19, %v1849_v42 }
 0x7f9   :  { %v1914_v52 = vpack.c.bf16 %v1904_v25, %v1903_v30 }
 0x7fa   :  { %v1913_v38 = vpack.c.bf16 %v1902_v11, %v1901_v16 }
 0x7fc   :  { %v2795_v5 = vpop.f32.mrb[92].mxu1  ;;  %2809 = vmatprep.mubr.msk.bf16.mxu1 %vm313_vm1, %v1913_v38 }
 0x7fd   :  { %v1862_v51 = vpop.f32.mrb[93].mxu1  ;;  %2810 = vmatmul.mubr.msk.bf16.gmra.mrb[104].mxu1 %vm313_vm1, %v1914_v52  ;;  %v1907_v43 = vmul.f32 %v2979_v28, %v2795_v5 }
 0x7fe   :  { %v2796_v50 = vpop.f32.mrb[94].mxu1  ;;  %v1905_v33 = vmul.f32 %v2977_v22, %v1862_v51 }
 0x7ff   :  { %v1908_v26 = vmul.f32 %v2981_v34, %v2796_v50  ;;  %v1865_v32 = vpop.f32.mrb[95].mxu1 }
 0x800   :  { %v1906_v31 = vmul.f32 %v2983_v18, %v1865_v32 }
 0x801   :  { %v1916_v56 = vpack.c.bf16 %v1908_v26, %v1907_v43 }
 0x802   :  { %v1915_v59 = vpack.c.bf16 %v1906_v31, %v1905_v33 }
 0x804   :  { %2813 = vmatprep.mubr.msk.bf16.mxu1 %vm313_vm1, %v1915_v59 }
 0x805   :  { %2814 = vmatmul.mubr.msk.bf16.gmra.mrb[108].mxu1 %vm313_vm1, %v1916_v56 }
 0x8c0   :  { %v2803_v13 = vpop.f32.mrb[96].mxu1 }
 0x8c1   :  { %v3848_v55 = vadd.f32 %v2803_v13, %v2377_v7  ;;  %v1998_v61 = vpop.f32.mrb[97].mxu1 }
 0x8c2   :  { %v2804_v60 = vpop.f32.mrb[98].mxu1  ;;  %v3853_v29 = vadd.f32 %v2377_v7, %v1998_v61 }
 0x8c3   :  { %v3850_v45 = vadd.f32 %v2804_v60, %v2377_v7  ;;  %2065 = vmax.xlane.f32.xlu0 %v3848_v55  ;;  %v2001_v21 = vpop.f32.mrb[99].mxu1 }
 0x8c4   :  { %v3856_v35 = vadd.f32 %v2377_v7, %v2001_v21 }
 0x8c5   :  { %2067 = vmax.xlane.f32.xlu1 %v3850_v45 }
 0x8c7   :  { %2061 = vmax.xlane.f32.xlu0 %v3853_v29 }
 0x8c8   :  { %v2807_v12 = vpop.f32.mrb[100].mxu1 }
 0x8c9   :  { %v3859_v41 = vadd.f32 %v2807_v12, %v2377_v7  ;;  %2063 = vmax.xlane.f32.xlu1 %v3856_v35  ;;  %v2014_v20 = vpop.f32.mrb[101].mxu1 }
 0x8ca   :  { %v2808_v58 = vpop.f32.mrb[102].mxu1  ;;  %v3865_v48 = vadd.f32 %v2377_v7, %v2014_v20 }
 0x8cb   :  { %v3862_v44 = vadd.f32 %v2808_v58, %v2377_v7  ;;  %2073 = vmax.xlane.f32.xlu0 %v3859_v41  ;;  %v2017_v8 = vpop.f32.mrb[103].mxu1 }
 0x8cc   :  { %v3868_v1 = vadd.f32 %v2377_v7, %v2017_v8 }
 0x8cd   :  { %2075 = vmax.xlane.f32.xlu1 %v3862_v44 }
 0x8cf   :  { %2069 = vmax.xlane.f32.xlu0 %v3865_v48 }
 0x8d0   :  { %v2811_v17 = vpop.f32.mrb[104].mxu1 }
 0x8d1   :  { %v3871_v24 = vadd.f32 %v2811_v17, %v2377_v7  ;;  %2071 = vmax.xlane.f32.xlu1 %v3868_v1  ;;  %v2030_v39 = vpop.f32.mrb[105].mxu1 }
 0x8d2   :  { %v2812_v54 = vpop.f32.mrb[106].mxu1  ;;  %v3877_v27 = vadd.f32 %v2377_v7, %v2030_v39 }
 0x8d3   :  { %v3874_v2 = vadd.f32 %v2812_v54, %v2377_v7  ;;  %2081 = vmax.xlane.f32.xlu0 %v3871_v24  ;;  %v2033_v14 = vpop.f32.mrb[107].mxu1 }
 0x8d4   :  { %v3880_v62 = vadd.f32 %v2377_v7, %v2033_v14 }
 0x8d5   :  { %2083 = vmax.xlane.f32.xlu1 %v3874_v2 }
 0x8d7   :  { %2077 = vmax.xlane.f32.xlu0 %v3877_v27 }
 0x8d8   :  { %v2815_v4 = vpop.f32.mrb[108].mxu1 }
 0x8d9   :  { %2079 = vmax.xlane.f32.xlu1 %v3880_v62  ;;  %v2046_v37 = vpop.f32.mrb[109].mxu1  ;;  %v3889_v3 = vadd.f32 %v2815_v4, %v2377_v7 }
 0x8da   :  { %v3884_v49 = vadd.f32 %v2377_v7, %v2046_v37  ;;  %v2816_v36 = vpop.f32.mrb[110].mxu1 }
 0x8db   :  { %v2049_v23 = vpop.f32.mrb[111].mxu1  ;;  %v3892_v6 = vadd.f32 %v2816_v36, %v2377_v7 }
 0x8dc   :  { %v3886_v47 = vadd.f32 %v2377_v7, %v2049_v23  ;;  %2085 = vmax.xlane.f32.xlu0 %v3884_v49 }
 0x8de   :  { %2087 = vmax.xlane.f32.xlu1 %v3886_v47 }
 0x8e0   :  { %2089 = vmax.xlane.f32.xlu0 %v3889_v3 }
 0x8e2   :  { %2091 = vmax.xlane.f32.xlu1 %v3892_v6 }
 0x950   :  { %v3896_v15 = vpop.xlane.xlu0 %2065 }
 0x951   :  { %v2095_v40 = vsub.f32 %v3848_v55, %v3896_v15 }
 0x952   :  { %v3900_v0 = vpop.xlane.xlu1 %2067 }
 0x953   :  { %v2113_v46 = vmul.f32 1.442695, %v2095_v40  ;;  %v2096_v53 = vsub.f32 %v3850_v45, %v3900_v0 }
 0x954   :  { %v3904_v57 = vpop.xlane.xlu0 %2061 }
 0x955   :  { %2984 = vpow2.f32 %v2113_v46  ;;  %v2115_v63 = vmul.f32 1.442695, %v2096_v53  ;;  %v2093_v10 = vsub.f32 %v3853_v29, %v3904_v57 }
 0x956   :  { %v3908_v9 = vpop.xlane.xlu1 %2063 }
 0x957   :  { %2986 = vpow2.f32 %v2115_v63  ;;  %v2109_v19 = vmul.f32 1.442695, %v2093_v10  ;;  %v2094_v30 = vsub.f32 %v3856_v35, %v3908_v9 }
 0x958   :  { %v3912_v25 = vpop.xlane.xlu0 %2073 }
 0x959   :  { %2988 = vpow2.f32 %v2109_v19  ;;  %v2111_v42 = vmul.f32 1.442695, %v2094_v30  ;;  %v2099_v16 = vsub.f32 %v3859_v41, %v3912_v25 }
 0x95a   :  { %v3916_v11 = vpop.xlane.xlu1 %2075 }
 0x95b   :  { %2990 = vpow2.f32 %v2111_v42  ;;  %v2121_v52 = vmul.f32 1.442695, %v2099_v16  ;;  %v2100_v38 = vsub.f32 %v3862_v44, %v3916_v11 }
 0x95c   :  { %v3920_v22 = vpop.xlane.xlu0 %2069 }
 0x95d   :  { %2992 = vpow2.f32 %v2121_v52  ;;  %v2123_v5 = vmul.f32 1.442695, %v2100_v38  ;;  %v2097_v28 = vsub.f32 %v3865_v48, %v3920_v22 }
 0x95e   :  { %v3924_v51 = vpop.xlane.xlu1 %2071 }
 0x95f   :  { %v2985_v34 = vpop.eup %2984  ;;  %2994 = vpow2.f32 %v2123_v5  ;;  %v2117_v50 = vmul.f32 1.442695, %v2097_v28  ;;  %v2098_v18 = vsub.f32 %v3868_v1, %v3924_v51 }
 0x960   :  { %2145 = vadd.xlane.f32.xlu0 %v2985_v34  ;;  %v3928_v43 = vpop.xlane.xlu0 %2081 }
 0x961   :  { %v2987_v26 = vpop.eup %2986  ;;  %2996 = vpow2.f32 %v2117_v50  ;;  %v2119_v32 = vmul.f32 1.442695, %v2098_v18  ;;  %v2103_v33 = vsub.f32 %v3871_v24, %v3928_v43 }
 0x962   :  { %v3932_v31 = vpop.xlane.xlu1 %2083  ;;  %2147 = vadd.xlane.f32.xlu1 %v2987_v26 }
 0x963   :  { %v2989_v56 = vpop.eup %2988  ;;  %2998 = vpow2.f32 %v2119_v32  ;;  %v2129_v59 = vmul.f32 1.442695, %v2103_v33  ;;  %v2104_v7 = vsub.f32 %v3874_v2, %v3932_v31 }
 0x964   :  { %2141 = vadd.xlane.f32.xlu0 %v2989_v56  ;;  %v3936_v13 = vpop.xlane.xlu0 %2077 }
 0x965   :  { %v2991_v61 = vpop.eup %2990  ;;  %3000 = vpow2.f32 %v2129_v59  ;;  %v2131_v60 = vmul.f32 1.442695, %v2104_v7  ;;  %v2101_v21 = vsub.f32 %v3877_v27, %v3936_v13 }
 0x966   :  { %v3940_v12 = vpop.xlane.xlu1 %2079  ;;  %2143 = vadd.xlane.f32.xlu1 %v2991_v61 }
 0x967   :  { %v2993_v20 = vpop.eup %2992  ;;  %3002 = vpow2.f32 %v2131_v60  ;;  %v2125_v58 = vmul.f32 1.442695, %v2101_v21  ;;  %v2102_v8 = vsub.f32 %v3880_v62, %v3940_v12 }
 0x968   :  { %2153 = vadd.xlane.f32.xlu0 %v2993_v20 }
 0x969   :  { %v2995_v17 = vpop.eup %2994  ;;  %3004 = vpow2.f32 %v2125_v58  ;;  %v2127_v39 = vmul.f32 1.442695, %v2102_v8  ;;  %v3944_v54 = vpop.xlane.xlu0 %2085 }
 0x96a   :  { %v2105_v14 = vsub.f32 %v3884_v49, %v3944_v54  ;;  %2155 = vadd.xlane.f32.xlu1 %v2995_v17 }
 0x96b   :  { %v2997_v4 = vpop.eup %2996  ;;  %3006 = vpow2.f32 %v2127_v39  ;;  %v3948_v37 = vpop.xlane.xlu1 %2087 }
 0x96c   :  { %v2133_v36 = vmul.f32 1.442695, %v2105_v14  ;;  %v2106_v23 = vsub.f32 %v3886_v47, %v3948_v37  ;;  %2149 = vadd.xlane.f32.xlu0 %v2997_v4 }
 0x96d   :  { %v2999_v40 = vpop.eup %2998  ;;  %v3952_v46 = vpop.xlane.xlu0 %2089 }
 0x96e   :  { %3008 = vpow2.f32 %v2133_v36  ;;  %v2135_v53 = vmul.f32 1.442695, %v2106_v23  ;;  %v2107_v63 = vsub.f32 %v3889_v3, %v3952_v46  ;;  %2151 = vadd.xlane.f32.xlu1 %v2999_v40 }
 0x96f   :  { %v3001_v10 = vpop.eup %3000  ;;  %v3956_v19 = vpop.xlane.xlu1 %2091 }
 0x970   :  { %3010 = vpow2.f32 %v2135_v53  ;;  %v2137_v30 = vmul.f32 1.442695, %v2107_v63  ;;  %v2108_v42 = vsub.f32 %v3892_v6, %v3956_v19  ;;  %2161 = vadd.xlane.f32.xlu0 %v3001_v10 }
 0x971   :  { %v3003_v16 = vpop.eup %3002 }
 0x972   :  { %3012 = vpow2.f32 %v2137_v30  ;;  %v2139_v52 = vmul.f32 1.442695, %v2108_v42  ;;  %2163 = vadd.xlane.f32.xlu1 %v3003_v16 }
 0x973   :  { %v3005_v38 = vpop.eup %3004 }
 0x974   :  { %3014 = vpow2.f32 %v2139_v52  ;;  %2157 = vadd.xlane.f32.xlu0 %v3005_v38 }
 0x975   :  { %v3007_v5 = vpop.eup %3006 }
 0x976   :  { %2159 = vadd.xlane.f32.xlu1 %v3007_v5 }
 0x978   :  { %v3009_v28 = vpop.eup %3008 }
 0x979   :  { %2165 = vadd.xlane.f32.xlu0 %v3009_v28 }
 0x97a   :  { %v3011_v34 = vpop.eup %3010 }
 0x97b   :  { %2167 = vadd.xlane.f32.xlu1 %v3011_v34 }
 0x97c   :  { %v3013_v50 = vpop.eup %3012 }
 0x97d   :  { %2169 = vadd.xlane.f32.xlu0 %v3013_v50 }
 0x97e   :  { %v3015_v18 = vpop.eup %3014 }
 0x97f   :  { %2171 = vadd.xlane.f32.xlu1 %v3015_v18 }
 0x9ed   :  { %v2146_v26 = vpop.xlane.xlu0 %2145 }
 0x9ee   :  { %3016 = vlog2.f32 %v2146_v26 }
 0x9ef   :  { %v2148_v32 = vpop.xlane.xlu1 %2147 }
 0x9f0   :  { %3018 = vlog2.f32 %v2148_v32 }
 0x9f1   :  { %v2142_v33 = vpop.xlane.xlu0 %2141 }
 0x9f2   :  { %3020 = vlog2.f32 %v2142_v33 }
 0x9f3   :  { %v2144_v56 = vpop.xlane.xlu1 %2143 }
 0x9f4   :  { %3022 = vlog2.f32 %v2144_v56 }
 0x9f5   :  { %v2154_v59 = vpop.xlane.xlu0 %2153 }
 0x9f6   :  { %3024 = vlog2.f32 %v2154_v59 }
 0x9f7   :  { %v2156_v7 = vpop.xlane.xlu1 %2155 }
 0x9f8   :  { %v3017_v61 = vpop.eup %3016  ;;  %3026 = vlog2.f32 %v2156_v7 }
 0x9f9   :  { %v2178_v60 = vmul.f32 0.6931472, %v3017_v61  ;;  %v2150_v21 = vpop.xlane.xlu0 %2149 }
 0x9fa   :  { %v3019_v20 = vpop.eup %3018  ;;  %3028 = vlog2.f32 %v2150_v21 }
 0x9fb   :  { %v2207_v58 = vadd.f32 %v2178_v60, %v3896_v15  ;;  %v2180_v8 = vmul.f32 0.6931472, %v3019_v20  ;;  %v2152_v17 = vpop.xlane.xlu1 %2151 }
 0x9fc   :  { %v3021_v39 = vpop.eup %3020  ;;  %3030 = vlog2.f32 %v2152_v17 }
 0x9fd   :  { %v2223_v14 = vsub.f32 %v3848_v55, %v2207_v58  ;;  %v2208_v4 = vadd.f32 %v2180_v8, %v3900_v0  ;;  %v2174_v36 = vmul.f32 0.6931472, %v3021_v39  ;;  %v2162_v23 = vpop.xlane.xlu0 %2161 }
 0x9fe   :  { %v3023_v40 = vpop.eup %3022  ;;  %3032 = vlog2.f32 %v2162_v23 }
 0x9ff   :  { %2239 = vst [vmem:[#allocation7 + $0x10] sm:$0xff] %v2223_v14  ;;  %v2224_v53 = vsub.f32 %v3850_v45, %v2208_v4  ;;  %v2205_v63 = vadd.f32 %v2174_v36, %v3904_v57  ;;  %v2176_v10 = vmul.f32 0.6931472, %v3023_v40  ;;  %v2164_v30 = vpop.xlane.xlu1 %2163 }
 0xa00   :  { %v3025_v15 = vpop.eup %3024  ;;  %3034 = vlog2.f32 %v2164_v30 }
 0xa01   :  { %2240 = vst [vmem:[#allocation7 + $0x18] sm:$0xff] %v2224_v53  ;;  %v2221_v42 = vsub.f32 %v3853_v29, %v2205_v63  ;;  %v2206_v55 = vadd.f32 %v2176_v10, %v3908_v9  ;;  %v2186_v16 = vmul.f32 0.6931472, %v3025_v15  ;;  %v2158_v0 = vpop.xlane.xlu0 %2157 }
 0xa02   :  { %v3027_v52 = vpop.eup %3026  ;;  %3036 = vlog2.f32 %v2158_v0 }
 0xa03   :  { %2237 = vst [vmem:[#allocation7] sm:$0xff] %v2221_v42  ;;  %v2222_v38 = vsub.f32 %v3856_v35, %v2206_v55  ;;  %v2211_v45 = vadd.f32 %v2186_v16, %v3912_v25  ;;  %v2188_v5 = vmul.f32 0.6931472, %v3027_v52  ;;  %v2160_v57 = vpop.xlane.xlu1 %2159 }
 0xa04   :  { %v3029_v28 = vpop.eup %3028  ;;  %3038 = vlog2.f32 %v2160_v57 }
 0xa05   :  { %2238 = vst [vmem:[#allocation7 + $0x8] sm:$0xff] %v2222_v38  ;;  %v2227_v34 = vsub.f32 %v3859_v41, %v2211_v45  ;;  %v2212_v29 = vadd.f32 %v2188_v5, %v3916_v11  ;;  %v2182_v50 = vmul.f32 0.6931472, %v3029_v28 }
 0xa06   :  { %v3031_v9 = vpop.eup %3030  ;;  %v2166_v18 = vpop.xlane.xlu0 %2165 }
 0xa07   :  { %2243 = vst [vmem:[#allocation7 + $0x30] sm:$0xff] %v2227_v34  ;;  %v2228_v26 = vsub.f32 %v3862_v44, %v2212_v29  ;;  %v2209_v32 = vadd.f32 %v2182_v50, %v3920_v22  ;;  %v2184_v35 = vmul.f32 0.6931472, %v3031_v9  ;;  %3040 = vlog2.f32 %v2166_v18 }
 0xa08   :  { %v3033_v25 = vpop.eup %3032  ;;  %v2168_v33 = vpop.xlane.xlu1 %2167 }
 0xa09   :  { %2244 = vst [vmem:[#allocation7 + $0x38] sm:$0xff] %v2228_v26  ;;  %v2225_v56 = vsub.f32 %v3865_v48, %v2209_v32  ;;  %v2210_v59 = vadd.f32 %v2184_v35, %v3924_v51  ;;  %v2194_v41 = vmul.f32 0.6931472, %v3033_v25  ;;  %3042 = vlog2.f32 %v2168_v33 }
 0xa0a   :  { %v3035_v11 = vpop.eup %3034  ;;  %v2170_v7 = vpop.xlane.xlu0 %2169 }
 0xa0b   :  { %2241 = vst [vmem:[#allocation7 + $0x20] sm:$0xff] %v2225_v56  ;;  %v2226_v61 = vsub.f32 %v3868_v1, %v2210_v59  ;;  %v2215_v44 = vadd.f32 %v2194_v41, %v3928_v43  ;;  %v2196_v60 = vmul.f32 0.6931472, %v3035_v11  ;;  %3044 = vlog2.f32 %v2170_v7 }
 0xa0c   :  { %v3037_v22 = vpop.eup %3036  ;;  %v2172_v21 = vpop.xlane.xlu1 %2171 }
 0xa0d   :  { %2242 = vst [vmem:[#allocation7 + $0x28] sm:$0xff] %v2226_v61  ;;  %v2231_v20 = vsub.f32 %v3871_v24, %v2215_v44  ;;  %v2216_v48 = vadd.f32 %v2196_v60, %v3932_v31  ;;  %v2190_v58 = vmul.f32 0.6931472, %v3037_v22  ;;  %3046 = vlog2.f32 %v2172_v21 }
 0xa0e   :  { %v3039_v51 = vpop.eup %3038 }
 0xa0f   :  { %2247 = vst [vmem:[#allocation7 + $0x50] sm:$0xff] %v2231_v20  ;;  %v2232_v8 = vsub.f32 %v3874_v2, %v2216_v48  ;;  %v2213_v17 = vadd.f32 %v2190_v58, %v3936_v13  ;;  %v2192_v1 = vmul.f32 0.6931472, %v3039_v51 }
 0xa11   :  { %v3041_v39 = vpop.eup %3040  ;;  %2248 = vst [vmem:[#allocation7 + $0x58] sm:$0xff] %v2232_v8  ;;  %v2229_v43 = vsub.f32 %v3877_v27, %v2213_v17  ;;  %v2214_v14 = vadd.f32 %v2192_v1, %v3940_v12 }
 0xa12   :  { %v2198_v4 = vmul.f32 0.6931472, %v3041_v39 }
 0xa13   :  { %v3043_v36 = vpop.eup %3042  ;;  %2245 = vst [vmem:[#allocation7 + $0x40] sm:$0xff] %v2229_v43  ;;  %v2230_v24 = vsub.f32 %v3880_v62, %v2214_v14 }
 0xa14   :  { %v2217_v31 = vadd.f32 %v2198_v4, %v3944_v54  ;;  %v2200_v23 = vmul.f32 0.6931472, %v3043_v36 }
 0xa15   :  { %v3045_v40 = vpop.eup %3044  ;;  %2246 = vst [vmem:[#allocation7 + $0x48] sm:$0xff] %v2230_v24 }
 0xa16   :  { %v2233_v2 = vsub.f32 %v3884_v49, %v2217_v31  ;;  %v2218_v13 = vadd.f32 %v2200_v23, %v3948_v37  ;;  %v2202_v53 = vmul.f32 0.6931472, %v3045_v40 }
 0xa17   :  { %v3047_v63 = vpop.eup %3046 }
 0xa18   :  { %2249 = vst [vmem:[#allocation7 + $0x60] sm:$0xff] %v2233_v2  ;;  %v2234_v27 = vsub.f32 %v3886_v47, %v2218_v13  ;;  %v2219_v12 = vadd.f32 %v2202_v53, %v3952_v46  ;;  %v2204_v10 = vmul.f32 0.6931472, %v3047_v63 }
 0xa1a   :  { %2250 = vst [vmem:[#allocation7 + $0x68] sm:$0xff] %v2234_v27  ;;  %v2235_v62 = vsub.f32 %v3889_v3, %v2219_v12  ;;  %v2220_v54 = vadd.f32 %v2204_v10, %v3956_v19 }
 0xa1c   :  { %2251 = vst [vmem:[#allocation7 + $0x70] sm:$0xff] %v2235_v62  ;;  %v2236_v49 = vsub.f32 %v3892_v6, %v2220_v54 }
 0xa1e   :  { %2252 = vst [vmem:[#allocation7 + $0x78] sm:$0xff] %v2236_v49 }
 0xa1f   :  { %3103 = shalt.err (!%p3100_p6)
}
 0xa20   :  { %s3104_s21 = scalar_lea.hbm %s4016_s12, 2048 }
 0xa21   :  { %p3105_p7 = scmp.ne.s32.totalorder %s4016_s12, %s3104_s21  ;;  %p3108_p8 = scmp.lt.u32.totalorder %s3104_s21, %s4016_s12 }
 0xa23   :  { %p3110_p9 = pnand %p3108_p8, %p3105_p7 }
 0xa25   :  { %3113 = shalt.err (!%p3110_p9)
}
 0xa26   :  { %s3126_s27 = smov 128   ;;  %s3127_s3 = smov 8  }
 0xa27   :  { %2264 = dma.vmem_to_hbm [thread:$0]  %s2259_s7, 2048, %s4016_s12, [#allocation4], %s3126_s27, %s3126_s27, %s3127_s3  }
 0xa28   :  { %3118 = dma.done.wait [#allocation4], 2048  }
 0xa29   :  { %3119 = vsyncadd [#allocation4], 4294965248 }
 0xa2a   :  { %2268 = vsyncpa [#allocation3], 1 }
 0xa2b   :  { %2269 = vsyncpa [#allocation6], 1 }
 0xa2c   :  { %2270 = vsyncpa [#allocation4], 1 }

</bundles_post_ra>
